<compile_context>
chip_gen: v6e
topology: v6e:2x2x1
jax: 0.10.0
libtpu: 0.0.40
codegen_flags: <defaults>
</compile_context>

<pallas_src>
import math

import jax
import jax.numpy as jnp
from jax.experimental import pallas as pl
from jax.experimental.pallas import tpu as pltpu


def _critic_kernel(x_ref, w1_ref, b1_ref, w2_ref, b2_ref, w3_ref, b3_ref, out_ref):
    # x_ref: (K, TILE_B) f32 — batch on lanes.
    x = x_ref[...]
    k_dim = x.shape[0]

    # ---- Layer 1 (K = 4): 4 outer-product FMAs on the VPU.  The lane
    # broadcast is of the fixed 256-value weight column (independent of
    # TILE_B); the activation row only needs a cheap sublane broadcast.
    w1 = w1_ref[...]                                   # (H1, K) f32
    acc = w1[:, 0:1] * x[0:1, :]                       # (H1, TILE_B)
    for k in range(1, k_dim):                          # static unroll (K = 4)
        acc = acc + w1[:, k:k + 1] * x[k:k + 1, :]
    h1 = jnp.maximum(acc + b1_ref[...], 0.0)           # bias + ReLU in f32

    # ---- Layer 2 on the MXU: W2 (H2, H1) bf16 @ h1 (H1, TILE_B) bf16,
    # f32 accumulation.
    h2 = jnp.dot(w2_ref[...], h1.astype(jnp.bfloat16),
                 preferred_element_type=jnp.float32)   # (H2, TILE_B) f32
    h2 = jnp.maximum(h2 + b2_ref[...], 0.0)

    # ---- Layer 3 (output width 1): VPU multiply + sublane reduce -> a
    # lane-dense (1, TILE_B) row (unmasked vector stores on writeback).
    v = jnp.sum(h2 * w3_ref[...], axis=0, keepdims=True) + b3_ref[...]
    out_ref[...] = v[None].astype(out_ref.dtype)       # (1, 1, TILE_B)


def _cdiv(a, b):
    return (a + b - 1) // b


def _choose_tiling(batch, max_tile):
    """Pick (tile, n_steps): tile is a multiple of 128, balanced across grid
    steps (minimal padding), capped at max_tile, and the grid has >= 2 steps
    whenever the batch allows it (so v7x can use both TensorCores)."""
    blocks = max(1, _cdiv(batch, 128))          # 128-row lane blocks
    max_blocks = max(1, max_tile // 128)
    n_steps = max(1, _cdiv(blocks, max_blocks))
    if n_steps == 1 and blocks >= 2:
        n_steps = 2                             # megacore sharding on v7x
    tile = _cdiv(blocks, n_steps) * 128         # balanced tile
    return tile, n_steps


def critic_forward(state, params, *, max_tile=2048):
    """state: (B, input_dims) f32; params: see init_params()."""
    w1, b1 = params["w1"], params["b1"]
    w2, b2 = params["w2"], params["b2"]
    w3, b3 = params["w3"], params["b3"]

    B, K = state.shape
    H1 = w1.shape[0]
    H2 = w2.shape[0]

    tile, n_steps = _choose_tiling(B, max_tile)
    b_pad = tile * n_steps

    # Feature-major input: (K, B), zero-padded on the batch (lane) axis.
    x_t = jnp.transpose(state)
    if b_pad != B:
        x_t = jnp.pad(x_t, ((0, 0), (0, b_pad - B)))

    out = pl.pallas_call(
        _critic_kernel,
        out_shape=jax.ShapeDtypeStruct((n_steps, 1, tile), jnp.float32),
        grid=(n_steps,),
        in_specs=[
            pl.BlockSpec((K, tile), lambda i: (0, i)),   # state (tiled over batch)
            pl.BlockSpec((H1, K), lambda i: (0, 0)),     # w1 (VMEM resident)
            pl.BlockSpec((H1, 1), lambda i: (0, 0)),     # b1 (resident)
            pl.BlockSpec((H2, H1), lambda i: (0, 0)),    # w2 bf16 (resident)
            pl.BlockSpec((H2, 1), lambda i: (0, 0)),     # b2 (resident)
            pl.BlockSpec((H2, 1), lambda i: (0, 0)),     # w3 column (resident)
            pl.BlockSpec((1, 1), lambda i: (0, 0)),      # b3 (resident)
        ],
        out_specs=pl.BlockSpec((1, 1, tile), lambda i: (i, 0, 0)),
        compiler_params=pltpu.CompilerParams(
            dimension_semantics=("parallel",),
        ),
    )(x_t, w1, b1, w2, b2, w3, b3)

    # (n_steps, 1, tile) row-major == batch order; slice padded rows off.
    return out.reshape(b_pad, 1)[:B]


def init_params(key, input_dims=4, fc1_dims=256, fc2_dims=256):
    """PyTorch-style init: U(-1/sqrt(fan_in), 1/sqrt(fan_in)).

    Weights use the PyTorch (out, in) layout.  Only w2 is bf16 (it dominates
    HBM->VMEM traffic); everything else stays f32 (no in-kernel casts).
    """
    ks = jax.random.split(key, 6)

    def linear(kw, kb, fan_in, fan_out, w_dtype=jnp.float32):
        bound = 1.0 / math.sqrt(fan_in)
        w = jax.random.uniform(kw, (fan_out, fan_in), jnp.float32, -bound, bound)
        b = jax.random.uniform(kb, (fan_out, 1), jnp.float32, -bound, bound)
        return w.astype(w_dtype), b

    w1, b1 = linear(ks[0], ks[1], input_dims, fc1_dims)                 # f32
    w2, b2 = linear(ks[2], ks[3], fc1_dims, fc2_dims, jnp.bfloat16)     # bf16
    w3_row, b3 = linear(ks[4], ks[5], fc2_dims, 1)                      # f32
    w3 = w3_row.reshape(fc2_dims, 1)   # (H2, 1) column for the sublane reduce
    return {"w1": w1, "b1": b1, "w2": w2, "b2": b2, "w3": w3, "b3": b3}


def _reference(state, params):
    """Plain-JAX reference with the same numerics (bf16 w2, f32 elsewhere)."""
    h1 = jnp.maximum(state @ params["w1"].T + params["b1"].T, 0.0)
    h2 = jnp.dot(h1.astype(jnp.bfloat16), params["w2"].T,
                 preferred_element_type=jnp.float32)
    h2 = jnp.maximum(h2 + params["b2"].T, 0.0)
    return h2 @ params["w3"] + params["b3"].T


if __name__ == "__main__":
    key = jax.random.PRNGKey(0)
    k_params, k_state1, k_state2 = jax.random.split(key, 3)

    INPUT_DIMS = 4
    params = init_params(k_params, input_dims=INPUT_DIMS, fc1_dims=256, fc2_dims=256)

    # Batch of 256 -> two grid steps of 128 (exercises megacore sharding on v7x).
    state = jax.random.normal(k_state1, (256, INPUT_DIMS), dtype=jnp.float32)
    value = jax.block_until_ready(critic_forward(state, params))
    ref = _reference(state, params)
    assert value.shape == (256, 1)
    assert jnp.allclose(value, ref, atol=1e-3, rtol=1e-3)

    # Ragged small batch (exercises the padding path, single grid step).
    state_small = jax.random.normal(k_state2, (40, INPUT_DIMS), dtype=jnp.float32)
    value_small = jax.block_until_ready(critic_forward(state_small, params))
    ref_small = _reference(state_small, params)
    assert value_small.shape == (40, 1)
    assert jnp.allclose(value_small, ref_small, atol=1e-3, rtol=1e-3)

    print("KERNEL_OK")
</pallas_src>

<mosaic_0001>
module attributes {stable_mosaic.version = 11 : i64} {
  func.func @_critic_kernel(%arg0: i32, %arg1: memref<4x128xf32, #tpu.memory_space<vmem>>, %arg2: memref<256x4xf32, #tpu.memory_space<vmem>>, %arg3: memref<256x1xf32, #tpu.memory_space<vmem>>, %arg4: memref<256x256xbf16, #tpu.memory_space<vmem>>, %arg5: memref<256x1xf32, #tpu.memory_space<vmem>>, %arg6: memref<256x1xf32, #tpu.memory_space<vmem>>, %arg7: memref<1x1xf32, #tpu.memory_space<vmem>>, %arg8: memref<1x1x128xf32, #tpu.memory_space<vmem>>) attributes {dimension_semantics = [#tpu.dimension_semantics<parallel>], iteration_bounds = array<i64: 2>, scalar_prefetch = 0 : i64, scratch_operands = 0 : i64, tpu.core_type = #tpu.core_type<tc>, window_params = [{transform_indices = @transform_0, window_bounds = array<i64: 4, 128>}, {pipeline_mode = #tpu.pipeline_mode<synchronous>, transform_indices = @transform_1, window_bounds = array<i64: 256, 4>}, {pipeline_mode = #tpu.pipeline_mode<synchronous>, transform_indices = @transform_2, window_bounds = array<i64: 256, 1>}, {pipeline_mode = #tpu.pipeline_mode<synchronous>, transform_indices = @transform_3, window_bounds = array<i64: 256, 256>}, {pipeline_mode = #tpu.pipeline_mode<synchronous>, transform_indices = @transform_4, window_bounds = array<i64: 256, 1>}, {pipeline_mode = #tpu.pipeline_mode<synchronous>, transform_indices = @transform_5, window_bounds = array<i64: 256, 1>}, {pipeline_mode = #tpu.pipeline_mode<synchronous>, transform_indices = @transform_6, window_bounds = array<i64: 1, 1>}, {transform_indices = @transform_7, window_bounds = array<i64: 1, 1, 128>}]} {
    %c0 = arith.constant 0 : index
    %c0_0 = arith.constant 0 : index
    %0 = vector.load %arg1[%c0, %c0_0] : memref<4x128xf32, #tpu.memory_space<vmem>>, vector<4x128xf32>
    %c0_1 = arith.constant 0 : index
    %c0_2 = arith.constant 0 : index
    %1 = vector.load %arg2[%c0_1, %c0_2] : memref<256x4xf32, #tpu.memory_space<vmem>>, vector<256x4xf32>
    %2 = vector.extract_strided_slice %1 {offsets = [0, 0], sizes = [256, 1], strides = [1, 1]} : vector<256x4xf32> to vector<256x1xf32>
    %3 = vector.extract_strided_slice %0 {offsets = [0, 0], sizes = [1, 128], strides = [1, 1]} : vector<4x128xf32> to vector<1x128xf32>
    %4 = vector.broadcast %2 : vector<256x1xf32> to vector<256x128xf32>
    %5 = vector.broadcast %3 : vector<1x128xf32> to vector<256x128xf32>
    %6 = arith.mulf %4, %5 : vector<256x128xf32>
    %7 = vector.extract_strided_slice %1 {offsets = [0, 1], sizes = [256, 1], strides = [1, 1]} : vector<256x4xf32> to vector<256x1xf32>
    %8 = vector.extract_strided_slice %0 {offsets = [1, 0], sizes = [1, 128], strides = [1, 1]} : vector<4x128xf32> to vector<1x128xf32>
    %9 = vector.broadcast %7 : vector<256x1xf32> to vector<256x128xf32>
    %10 = vector.broadcast %8 : vector<1x128xf32> to vector<256x128xf32>
    %11 = arith.mulf %9, %10 : vector<256x128xf32>
    %12 = arith.addf %6, %11 : vector<256x128xf32>
    %13 = vector.extract_strided_slice %1 {offsets = [0, 2], sizes = [256, 1], strides = [1, 1]} : vector<256x4xf32> to vector<256x1xf32>
    %14 = vector.extract_strided_slice %0 {offsets = [2, 0], sizes = [1, 128], strides = [1, 1]} : vector<4x128xf32> to vector<1x128xf32>
    %15 = vector.broadcast %13 : vector<256x1xf32> to vector<256x128xf32>
    %16 = vector.broadcast %14 : vector<1x128xf32> to vector<256x128xf32>
    %17 = arith.mulf %15, %16 : vector<256x128xf32>
    %18 = arith.addf %12, %17 : vector<256x128xf32>
    %19 = vector.extract_strided_slice %1 {offsets = [0, 3], sizes = [256, 1], strides = [1, 1]} : vector<256x4xf32> to vector<256x1xf32>
    %20 = vector.extract_strided_slice %0 {offsets = [3, 0], sizes = [1, 128], strides = [1, 1]} : vector<4x128xf32> to vector<1x128xf32>
    %21 = vector.broadcast %19 : vector<256x1xf32> to vector<256x128xf32>
    %22 = vector.broadcast %20 : vector<1x128xf32> to vector<256x128xf32>
    %23 = arith.mulf %21, %22 : vector<256x128xf32>
    %24 = arith.addf %18, %23 : vector<256x128xf32>
    %c0_3 = arith.constant 0 : index
    %c0_4 = arith.constant 0 : index
    %25 = vector.load %arg3[%c0_3, %c0_4] : memref<256x1xf32, #tpu.memory_space<vmem>>, vector<256x1xf32>
    %26 = vector.broadcast %25 : vector<256x1xf32> to vector<256x128xf32>
    %27 = arith.addf %24, %26 : vector<256x128xf32>
    %cst = arith.constant 0.000000e+00 : f32
    %28 = vector.broadcast %cst : f32 to vector<256x128xf32>
    %29 = arith.maximumf %27, %28 : vector<256x128xf32>
    %c0_5 = arith.constant 0 : index
    %c0_6 = arith.constant 0 : index
    %30 = vector.load %arg4[%c0_5, %c0_6] : memref<256x256xbf16, #tpu.memory_space<vmem>>, vector<256x256xbf16>
    %31 = arith.truncf %29 : vector<256x128xf32> to vector<256x128xbf16>
    %cst_7 = arith.constant dense<0.000000e+00> : vector<256x128xf32>
    %32 = tpu.matmul %30, %31, %cst_7 {dimension_numbers = #tpu.dot_dimension_numbers<[1], [0], [0], [1], [0, 0, 1, 1], [], []>} : vector<256x256xbf16>, vector<256x128xbf16>, vector<256x128xf32> -> vector<256x128xf32>
    %c0_8 = arith.constant 0 : index
    %c0_9 = arith.constant 0 : index
    %33 = vector.load %arg5[%c0_8, %c0_9] : memref<256x1xf32, #tpu.memory_space<vmem>>, vector<256x1xf32>
    %34 = vector.broadcast %33 : vector<256x1xf32> to vector<256x128xf32>
    %35 = arith.addf %32, %34 : vector<256x128xf32>
    %cst_10 = arith.constant 0.000000e+00 : f32
    %36 = vector.broadcast %cst_10 : f32 to vector<256x128xf32>
    %37 = arith.maximumf %35, %36 : vector<256x128xf32>
    %c0_11 = arith.constant 0 : index
    %c0_12 = arith.constant 0 : index
    %38 = vector.load %arg6[%c0_11, %c0_12] : memref<256x1xf32, #tpu.memory_space<vmem>>, vector<256x1xf32>
    %39 = vector.broadcast %38 : vector<256x1xf32> to vector<256x128xf32>
    %40 = arith.mulf %37, %39 : vector<256x128xf32>
    %cst_13 = arith.constant dense<0.000000e+00> : vector<128xf32>
    %41 = vector.multi_reduction <add>, %40, %cst_13 [0] : vector<256x128xf32> to vector<128xf32>
    %42 = vector.shape_cast %41 : vector<128xf32> to vector<1x128xf32>
    %c0_14 = arith.constant 0 : index
    %c0_15 = arith.constant 0 : index
    %43 = vector.load %arg7[%c0_14, %c0_15] : memref<1x1xf32, #tpu.memory_space<vmem>>, vector<1x1xf32>
    %44 = vector.broadcast %43 : vector<1x1xf32> to vector<1x128xf32>
    %45 = arith.addf %42, %44 : vector<1x128xf32>
    %46 = vector.shape_cast %45 : vector<1x128xf32> to vector<1x1x128xf32>
    %c0_16 = arith.constant 0 : index
    %c0_17 = arith.constant 0 : index
    %c0_18 = arith.constant 0 : index
    %47 = vector.load %arg8[%c0_16, %c0_17, %c0_18] : memref<1x1x128xf32, #tpu.memory_space<vmem>>, vector<1x1x128xf32>
    tpu.vector_store %arg8[%c0_16, %c0_17, %c0_18], %46 {strides = array<i32>} : memref<1x1x128xf32, #tpu.memory_space<vmem>>, vector<1x1x128xf32>,
    return
  }
  func.func @transform_0(%arg0: i32) -> (i32, i32) {
    %c0_i32 = arith.constant 0 : i32
    %c0_i32_0 = arith.constant 0 : i32
    return %c0_i32, %arg0 : i32, i32
  }
  func.func @transform_1(%arg0: i32) -> (i32, i32) {
    %c0_i32 = arith.constant 0 : i32
    %c0_i32_0 = arith.constant 0 : i32
    %c0_i32_1 = arith.constant 0 : i32
    return %c0_i32, %c0_i32_0 : i32, i32
  }
  func.func @transform_2(%arg0: i32) -> (i32, i32) {
    %c0_i32 = arith.constant 0 : i32
    %c0_i32_0 = arith.constant 0 : i32
    %c0_i32_1 = arith.constant 0 : i32
    return %c0_i32, %c0_i32_0 : i32, i32
  }
  func.func @transform_3(%arg0: i32) -> (i32, i32) {
    %c0_i32 = arith.constant 0 : i32
    %c0_i32_0 = arith.constant 0 : i32
    %c0_i32_1 = arith.constant 0 : i32
    return %c0_i32, %c0_i32_0 : i32, i32
  }
  func.func @transform_4(%arg0: i32) -> (i32, i32) {
    %c0_i32 = arith.constant 0 : i32
    %c0_i32_0 = arith.constant 0 : i32
    %c0_i32_1 = arith.constant 0 : i32
    return %c0_i32, %c0_i32_0 : i32, i32
  }
  func.func @transform_5(%arg0: i32) -> (i32, i32) {
    %c0_i32 = arith.constant 0 : i32
    %c0_i32_0 = arith.constant 0 : i32
    %c0_i32_1 = arith.constant 0 : i32
    return %c0_i32, %c0_i32_0 : i32, i32
  }
  func.func @transform_6(%arg0: i32) -> (i32, i32) {
    %c0_i32 = arith.constant 0 : i32
    %c0_i32_0 = arith.constant 0 : i32
    %c0_i32_1 = arith.constant 0 : i32
    return %c0_i32, %c0_i32_0 : i32, i32
  }
  func.func @transform_7(%arg0: i32) -> (i32, i32, i32) {
    %c0_i32 = arith.constant 0 : i32
    %c0_i32_0 = arith.constant 0 : i32
    %c0_i32_1 = arith.constant 0 : i32
    return %arg0, %c0_i32, %c0_i32_0 : i32, i32, i32
  }
}

</mosaic_0001>

<bundles_post_ra>
// kernel: tpu_custom_call.1
= control target key start
LH: loop header
LB: loop body
LE: loop exit
PB: predicated region body
PF: predicated region fallthrough
CT: control target
= control target key end

     0   :  { %s4242_s0 = inlined_call_operand.vmem [shape: f32[4,256], index: 0, kind: input, shape index: {}]   ;;  %s4243_s1 = inlined_call_operand.vmem [shape: f32[256,4], index: 1, kind: input, shape index: {}]   ;;  %s4244_s2 = inlined_call_operand.vmem [shape: f32[256,1], index: 2, kind: input, shape index: {}]   ;;  %s4245_s3 = inlined_call_operand.vmem [shape: bf16[256,256], index: 3, kind: input, shape index: {}]   ;;  %s4246_s4 = inlined_call_operand.vmem [shape: f32[256,1], index: 4, kind: input, shape index: {}]   ;;  %s4247_s5 = inlined_call_operand.vmem [shape: f32[256,1], index: 5, kind: input, shape index: {}]   ;;  %s4248_s6 = inlined_call_operand.<no memory space> [shape: f32[1,1], index: 6, kind: input, shape index: {}]   ;;  %s4249_s7 = inlined_call_operand.hbm [shape: f32[2,1,128], index: 7, kind: output, shape index: {}]  }
   0x1   :  { %v12_v0 = vstv %s4248_s6 }
   0x2   :  { %13 = vst [vmem:[#allocation2] sm:$0x1] %v12_v0 }
   0x3   :  { %14 = vsyncpa [#allocation4], 0 }
   0x4   :  { %16 = vsyncpa [#allocation4 + $0x1], 0  ;;  %s2665_s26 = smov 0   ;;  %s2667_s27 = smov 0  }
   0x5   :  { %s2669_s28 = smov 0   ;;  %s2671_s29 = smov 0  }
   0x6 LB: > { %s2686_s6 = sadd.s32 4294967295, %s2615_s29   ;;  %s2283_s30 = sadd.s32 4294967294, %s2615_s29   ;;  %s2615_s29 = sphi %s2671_s29, %s4460_s29   ;;  %s2611_s28 = sphi %s2669_s28, %s4459_s28   ;;  %s2607_s27 = sphi %s2667_s27, %s4458_s27   ;;  %s2603_s26 = sphi %s2665_s26, %s4457_s26  }
   0x7   : > { %s2690_s8 = sadd.s32 1, %s2615_s29   ;;  %s181_s9 = sadd.s32 1, %s2611_s28 }
   0x8   : > { %s178_s10 = ssub.s32 %s2615_s29, %s2690_s8  ;;  %p191_p0 = scmp.ne.s32.totalorder %s2611_s28, %s2607_s27 }
   0x9   : > { %p179_p1 = scmp.eq.s32.totalorder %s178_s10, 0  ;;  %p192_p2 = scmp.eq.s32.totalorder %s2686_s6, 1 }
   0xa   : > { %p197_p3 = scmp.ne.s32.totalorder %s2607_s27, %s2603_s26  ;;  %p198_p4 = scmp.eq.s32.totalorder %s2283_s30, 1 }
   0xb   : > { %s2701_s11 = scalar_select %p179_p1, %s2611_s28, %s181_s9  }
   0xc   : > { %p2703_p5 = por %p192_p2, %p191_p0  ;;  %p2707_p6 = por %p198_p4, %p197_p3 }
   0xd   : > { %p2286_p7 = scmp.ge.s32.totalorder %s2615_s29, 1  ;;  %p241_p8 = scmp.lt.s32.totalorder %s2615_s29, 3 }
   0xf   : > { %p242_p9 = pnand %p2286_p7, %p241_p8 }
  0x11   : > { %245 = sbr.rel (%p242_p9) target bundleno = 817 (0x331), region = 48 }
  0x16   : > { %v2716_v1 = vld [vmem:[%s4243_s1 + $0x10] sm:$0xff]  ;;  %v2721_v2 = vld [vmem:[%s4243_s1] sm:$0xff]  ;;  %v2617_v3 = vmov 1   ;;  %v4252_v4 = vmov 0   ;;  %v2729_v5 = vld [vmem:[%s4243_s1 + $0x18] sm:$0xff]  ;;  %v2619_v21 = vmov 2  }
  0x17   : > { %2495 = vset.pattern.permute.xlu0 %v2617_v3  ;;  %2494 = vset.pattern.permute.xlu1 %v4252_v4  ;;  %v2736_v6 = vld [vmem:[%s4243_s1 + $0x28] sm:$0xff]  ;;  %v2743_v7 = vld [vmem:[%s4243_s1 + $0x38] sm:$0xff]  ;;  %v2841_v22 = vld [vmem:[%s4243_s1 + $0x20] sm:$0xff]  ;;  %v4250_v38 = vmov 3   ;;  %p271_p10 = scmp.lt.s32.totalorder %s2686_s6, 1  ;;  %s269_s24 = sand.u32 1, %s2607_s27  }
  0x18   : > { %321 = vperm.xlu1 %2494, %v2716_v1   ;;  %506 = vperm.xlu0 %2495, %v2721_v2   ;;  %v2748_v8 = vld [vmem:[%s4243_s1 + $0x48] sm:$0xff]  ;;  %v2755_v9 = vld [vmem:[%s4243_s1 + $0x58] sm:$0xff]  ;;  %v2848_v23 = vld [vmem:[%s4243_s1 + $0x30] sm:$0xff]  ;;  %s2320_s25 = sshll.u32 %s2686_s6, 4  ;;  %s270_s30 = scalar_lea.vmem [#allocation3], %s269_s24 }
  0x19   : > { %v2764_v10 = vld [vmem:[%s4243_s1 + $0x68] sm:$0xff]  ;;  %v2771_v11 = vld [vmem:[%s4243_s1 + $0x78] sm:$0xff]  ;;  %v2855_v24 = vld [vmem:[%s4243_s1 + $0x40] sm:$0xff]  ;;  %s272_s15 = scalar_select %p271_p10, %s2686_s6, 1 }
  0x1a   : > { %v2778_v12 = vld [vmem:[%s4243_s1 + $0x88] sm:$0xff]  ;;  %v2785_v13 = vld [vmem:[%s4243_s1 + $0x98] sm:$0xff]  ;;  %v2862_v25 = vld [vmem:[%s4243_s1 + $0x50] sm:$0xff]  ;;  %s2216_s16 = scalar_lea.sflag [#allocation4], %s269_s24  ;;  %s2621_s6 = smov [#allocation3]  }
  0x1b   : > { %v2792_v14 = vld [vmem:[%s4243_s1 + $0xa8] sm:$0xff]  ;;  %v2799_v15 = vld [vmem:[%s4243_s1 + $0xb8] sm:$0xff]  ;;  %v2869_v26 = vld [vmem:[%s4243_s1 + $0x60] sm:$0xff]  ;;  %s2287_s20 = sshll.u32 %s272_s15, 2  ;;  %s2226_s15 = scalar_lea.hbm %s4249_s7, %s2320_s25 }
  0x1c   : > { %326 = vperm.xlu1 %2494, %v2729_v5   ;;  %518 = vperm.xlu0 %2495, %v2729_v5   ;;  %v2806_v16 = vld [vmem:[%s4243_s1 + $0xc8] sm:$0xff]  ;;  %v2813_v17 = vld [vmem:[%s4243_s1 + $0xd8] sm:$0xff]  ;;  %v2876_v27 = vld [vmem:[%s4243_s1 + $0x70] sm:$0xff]  ;;  %s274_s9 = scalar_lea.vmem %s4242_s0, %s2287_s20  ;;  %s2559_s18 = sshll.u32 %s2621_s6, 4  ;;  %s2560_s18 = int_to_ptr.vmem [resolvable:$false] %s2559_s18 }
  0x1d   : > { %v2820_v18 = vld [vmem:[%s4243_s1 + $0xe8] sm:$0xff]  ;;  %v2827_v19 = vld [vmem:[%s4243_s1 + $0xf8] sm:$0xff]  ;;  %v2883_v28 = vld [vmem:[%s4243_s1 + $0x80] sm:$0xff]  ;;  %s2561_s19 = scalar_lea.vmem %s2560_s18, 32 }
  0x1e   : > { %v2834_v20 = vld [vmem:[%s4243_s1 + $0x8] sm:$0xff]  ;;  %v2890_v29 = vld [vmem:[%s4243_s1 + $0x90] sm:$0xff]  ;;  %v2897_v30 = vld [vmem:[%s4243_s1 + $0xa0] sm:$0xff] }
  0x1f   : > { %v2904_v31 = vld [vmem:[%s4243_s1 + $0xb0] sm:$0xff]  ;;  %v2911_v32 = vld [vmem:[%s4243_s1 + $0xc0] sm:$0xff] }
  0x20   : > { %336 = vperm.xlu1 %2494, %v2736_v6   ;;  %526 = vperm.xlu0 %2495, %v2736_v6   ;;  %v2918_v33 = vld [vmem:[%s4243_s1 + $0xd0] sm:$0xff]  ;;  %v2925_v34 = vld [vmem:[%s4243_s1 + $0xe0] sm:$0xff] }
  0x21   : > { %v2932_v35 = vld [vmem:[%s4243_s1 + $0xf0] sm:$0xff] }
  0x24   : > { %346 = vperm.xlu1 %2494, %v2743_v7   ;;  %534 = vperm.xlu0 %2495, %v2743_v7  }
  0x28   : > { %356 = vperm.xlu1 %2494, %v2748_v8   ;;  %542 = vperm.xlu0 %2495, %v2748_v8  }
  0x2c   : > { %366 = vperm.xlu1 %2494, %v2755_v9   ;;  %550 = vperm.xlu0 %2495, %v2755_v9  }
  0x30   : > { %376 = vperm.xlu1 %2494, %v2764_v10   ;;  %558 = vperm.xlu0 %2495, %v2764_v10  }
  0x34   : > { %386 = vperm.xlu1 %2494, %v2771_v11   ;;  %566 = vperm.xlu0 %2495, %v2771_v11  }
  0x38   : > { %396 = vperm.xlu1 %2494, %v2778_v12   ;;  %574 = vperm.xlu0 %2495, %v2778_v12  }
  0x3c   : > { %406 = vperm.xlu1 %2494, %v2785_v13   ;;  %582 = vperm.xlu0 %2495, %v2785_v13  }
  0x40   : > { %416 = vperm.xlu1 %2494, %v2792_v14   ;;  %590 = vperm.xlu0 %2495, %v2792_v14  }
  0x44   : > { %426 = vperm.xlu1 %2494, %v2799_v15   ;;  %598 = vperm.xlu0 %2495, %v2799_v15  }
  0x48   : > { %436 = vperm.xlu1 %2494, %v2806_v16   ;;  %606 = vperm.xlu0 %2495, %v2806_v16  }
  0x4c   : > { %446 = vperm.xlu1 %2494, %v2813_v17   ;;  %614 = vperm.xlu0 %2495, %v2813_v17  }
  0x50   : > { %456 = vperm.xlu1 %2494, %v2820_v18   ;;  %622 = vperm.xlu0 %2495, %v2820_v18  }
  0x54   : > { %466 = vperm.xlu1 %2494, %v2827_v19   ;;  %630 = vperm.xlu0 %2495, %v2827_v19  }
  0x58   : > { %2496 = vset.pattern.permute.xlu1 %v2617_v3  ;;  %2498 = vset.pattern.permute.xlu0 %v2619_v21 }
  0x59   : > { %510 = vperm.xlu1 %2496, %v2834_v20   ;;  %706 = vperm.xlu0 %2498, %v2834_v20  }
  0x5d   : > { %514 = vperm.xlu1 %2496, %v2716_v1   ;;  %718 = vperm.xlu0 %2498, %v2841_v22  }
  0x61   : > { %522 = vperm.xlu1 %2496, %v2841_v22   ;;  %726 = vperm.xlu0 %2498, %v2848_v23  }
  0x65   : > { %530 = vperm.xlu1 %2496, %v2848_v23   ;;  %734 = vperm.xlu0 %2498, %v2855_v24  }
  0x69   : > { %538 = vperm.xlu1 %2496, %v2855_v24   ;;  %742 = vperm.xlu0 %2498, %v2862_v25  }
  0x6d   : > { %546 = vperm.xlu1 %2496, %v2862_v25   ;;  %750 = vperm.xlu0 %2498, %v2869_v26  }
  0x71   : > { %554 = vperm.xlu1 %2496, %v2869_v26   ;;  %758 = vperm.xlu0 %2498, %v2876_v27  }
  0x75   : > { %562 = vperm.xlu1 %2496, %v2876_v27   ;;  %766 = vperm.xlu0 %2498, %v2883_v28  }
  0x79   : > { %570 = vperm.xlu1 %2496, %v2883_v28   ;;  %774 = vperm.xlu0 %2498, %v2890_v29  }
  0x7d   : > { %578 = vperm.xlu1 %2496, %v2890_v29   ;;  %782 = vperm.xlu0 %2498, %v2897_v30  }
  0x81   : > { %586 = vperm.xlu1 %2496, %v2897_v30   ;;  %790 = vperm.xlu0 %2498, %v2904_v31  }
  0x85   : > { %594 = vperm.xlu1 %2496, %v2904_v31   ;;  %798 = vperm.xlu0 %2498, %v2911_v32  }
  0x89   : > { %602 = vperm.xlu1 %2496, %v2911_v32   ;;  %806 = vperm.xlu0 %2498, %v2918_v33  }
  0x8d   : > { %610 = vperm.xlu1 %2496, %v2918_v33   ;;  %814 = vperm.xlu0 %2498, %v2925_v34  }
  0x91   : > { %618 = vperm.xlu1 %2496, %v2925_v34   ;;  %822 = vperm.xlu0 %2498, %v2932_v35  }
  0x93   : > { %v2936_v36 = vpop.permute.xlu1 %321  ;;  %v2938_v37 = vpop.permute.xlu0 %506 }
  0x95   : > { %626 = vperm.xlu1 %2496, %v2932_v35   ;;  %2499 = vset.pattern.permute.xlu0 %v4250_v38 }
  0x96   : > { %898 = vperm.xlu0 %2499, %v2721_v2  }
  0x97   : > { %v2943_v39 = vpop.permute.xlu1 %326  ;;  %v2945_v40 = vpop.permute.xlu0 %518 }
  0x99   : > { %2497 = vset.pattern.permute.xlu1 %v2619_v21 }
  0x9a   : > { %702 = vperm.xlu1 %2497, %v2721_v2   ;;  %910 = vperm.xlu0 %2499, %v2729_v5  }
  0x9b   : > { %v2949_v41 = vpop.permute.xlu1 %336  ;;  %v2951_v42 = vpop.permute.xlu0 %526 }
  0x9e   : > { %710 = vperm.xlu1 %2497, %v2716_v1   ;;  %918 = vperm.xlu0 %2499, %v2736_v6  }
  0x9f   : > { %v2955_v43 = vpop.permute.xlu1 %346  ;;  %v2957_v44 = vpop.permute.xlu0 %534 }
  0xa2   : > { %714 = vperm.xlu1 %2497, %v2729_v5   ;;  %926 = vperm.xlu0 %2499, %v2743_v7  }
  0xa3   : > { %v2961_v45 = vpop.permute.xlu1 %356  ;;  %v2963_v46 = vpop.permute.xlu0 %542 }
  0xa6   : > { %722 = vperm.xlu1 %2497, %v2736_v6   ;;  %934 = vperm.xlu0 %2499, %v2748_v8  }
  0xa7   : > { %v2967_v47 = vpop.permute.xlu1 %366  ;;  %v2969_v48 = vpop.permute.xlu0 %550 }
  0xaa   : > { %730 = vperm.xlu1 %2497, %v2743_v7   ;;  %942 = vperm.xlu0 %2499, %v2755_v9  }
  0xab   : > { %v2973_v49 = vpop.permute.xlu1 %376  ;;  %v2975_v50 = vpop.permute.xlu0 %558 }
  0xae   : > { %738 = vperm.xlu1 %2497, %v2748_v8   ;;  %950 = vperm.xlu0 %2499, %v2764_v10  }
  0xaf   : > { %v2979_v51 = vpop.permute.xlu1 %386  ;;  %v2981_v52 = vpop.permute.xlu0 %566 }
  0xb2   : > { %746 = vperm.xlu1 %2497, %v2755_v9   ;;  %958 = vperm.xlu0 %2499, %v2771_v11  }
  0xb3   : > { %v2985_v53 = vpop.permute.xlu1 %396  ;;  %v2987_v54 = vpop.permute.xlu0 %574 }
  0xb6   : > { %754 = vperm.xlu1 %2497, %v2764_v10   ;;  %966 = vperm.xlu0 %2499, %v2778_v12  }
  0xb7   : > { %v2991_v55 = vpop.permute.xlu1 %406  ;;  %v2993_v56 = vpop.permute.xlu0 %582 }
  0xb8   : > { %4258 = vst [vmem:[#allocation6_spill] sm:$0xff] %v2991_v55  ;;  %4259 = vst [vmem:[#allocation7_spill] sm:$0xff] %v2993_v56 }
  0xba   : > { %762 = vperm.xlu1 %2497, %v2771_v11   ;;  %974 = vperm.xlu0 %2499, %v2785_v13  }
  0xbb   : > { %v2997_v57 = vpop.permute.xlu1 %416  ;;  %v2999_v58 = vpop.permute.xlu0 %590 }
  0xbc   : > { %4260 = vst [vmem:[#allocation8_spill] sm:$0xff] %v2997_v57  ;;  %4261 = vst [vmem:[#allocation9_spill] sm:$0xff] %v2999_v58 }
  0xbe   : > { %770 = vperm.xlu1 %2497, %v2778_v12   ;;  %982 = vperm.xlu0 %2499, %v2792_v14  }
  0xbf   : > { %v3003_v59 = vpop.permute.xlu1 %426  ;;  %v3005_v60 = vpop.permute.xlu0 %598 }
  0xc0   : > { %4262 = vst [vmem:[#allocation10_spill] sm:$0xff] %v3003_v59  ;;  %4263 = vst [vmem:[#allocation11_spill] sm:$0xff] %v3005_v60 }
  0xc2   : > { %778 = vperm.xlu1 %2497, %v2785_v13   ;;  %990 = vperm.xlu0 %2499, %v2799_v15  }
  0xc3   : > { %v3009_v61 = vpop.permute.xlu1 %436  ;;  %v3011_v62 = vpop.permute.xlu0 %606 }
  0xc4   : > { %4264 = vst [vmem:[#allocation12_spill] sm:$0xff] %v3009_v61  ;;  %4265 = vst [vmem:[#allocation13_spill] sm:$0xff] %v3011_v62 }
  0xc6   : > { %786 = vperm.xlu1 %2497, %v2792_v14   ;;  %1018 = vperm.xlu0 %2499, %v2932_v35  }
  0xc7   : > { %v3015_v63 = vpop.permute.xlu1 %446  ;;  %v3017_v0 = vpop.permute.xlu0 %614 }
  0xc8   : > { %4266 = vst [vmem:[#allocation14_spill] sm:$0xff] %v3017_v0 }
  0xca   : > { %794 = vperm.xlu1 %2497, %v2799_v15   ;;  %1010 = vperm.xlu0 %2499, %v2925_v34  }
  0xcb   : > { %v3021_v3 = vpop.permute.xlu1 %456  ;;  %v3023_v5 = vpop.permute.xlu0 %622 }
  0xce   : > { %802 = vperm.xlu1 %2497, %v2806_v16   ;;  %1006 = vperm.xlu0 %2499, %v2813_v17  }
  0xcf   : > { %v3027_v6 = vpop.permute.xlu1 %466  ;;  %v3029_v7 = vpop.permute.xlu0 %630 }
  0xd2   : > { %810 = vperm.xlu1 %2497, %v2813_v17   ;;  %2503 = vset.pattern.permute.xlu0 %v4252_v4 }
  0xd3   : > { %311 = vperm.xlu0 %2503, %v2721_v2  }
  0xd4   : > { %v3034_v8 = vpop.permute.xlu1 %510  ;;  %v3036_v9 = vpop.permute.xlu0 %706 }
  0xd5   : > { %4267 = vst [vmem:[#allocation15_spill] sm:$0xff] %v3034_v8  ;;  %4268 = vst [vmem:[#allocation16_spill] sm:$0xff] %v3036_v9 }
  0xd6   : > { %818 = vperm.xlu1 %2497, %v2820_v18  }
  0xd7   : > { %316 = vperm.xlu0 %2503, %v2834_v20  }
  0xd8   : > { %v3040_v10 = vpop.permute.xlu1 %514  ;;  %v3042_v11 = vpop.permute.xlu0 %718 }
  0xd9   : > { %4269 = vst [vmem:[#allocation17_spill] sm:$0xff] %v3040_v10  ;;  %4270 = vst [vmem:[#allocation18_spill] sm:$0xff] %v3042_v11 }
  0xda   : > { %826 = vperm.xlu1 %2497, %v2827_v19  }
  0xdb   : > { %331 = vperm.xlu0 %2503, %v2841_v22  }
  0xdc   : > { %v3046_v12 = vpop.permute.xlu1 %522  ;;  %v3048_v13 = vpop.permute.xlu0 %726 }
  0xdd   : > { %4271 = vst [vmem:[#allocation19_spill] sm:$0xff] %v3046_v12  ;;  %4272 = vst [vmem:[#allocation20_spill] sm:$0xff] %v3048_v13 }
  0xde   : > { %2500 = vset.pattern.permute.xlu1 %v4250_v38 }
  0xdf   : > { %902 = vperm.xlu1 %2500, %v2834_v20   ;;  %341 = vperm.xlu0 %2503, %v2848_v23  }
  0xe0   : > { %v3053_v2 = vpop.permute.xlu1 %530  ;;  %v3055_v14 = vpop.permute.xlu0 %734 }
  0xe1   : > { %4273 = vst [vmem:[#allocation21_spill] sm:$0xff] %v3053_v2  ;;  %4274 = vst [vmem:[#allocation22_spill] sm:$0xff] %v3055_v14  ;;  %v1106_v2 = vld [vmem:[%s4244_s2 + $0x68] sm:$0xff] }
  0xe3   : > { %906 = vperm.xlu1 %2500, %v2716_v1   ;;  %351 = vperm.xlu0 %2503, %v2855_v24  }
  0xe4   : > { %v3059_v15 = vpop.permute.xlu1 %538  ;;  %v3061_v17 = vpop.permute.xlu0 %742 }
  0xe5   : > { %4275 = vst [vmem:[#allocation23_spill] sm:$0xff] %v3059_v15  ;;  %4276 = vst [vmem:[#allocation24_spill] sm:$0xff] %v3061_v17 }
  0xe7   : > { %914 = vperm.xlu1 %2500, %v2841_v22   ;;  %361 = vperm.xlu0 %2503, %v2862_v25  }
  0xe8   : > { %v3065_v21 = vpop.permute.xlu1 %546  ;;  %v3067_v20 = vpop.permute.xlu0 %750 }
  0xe9   : > { %4277 = vst [vmem:[#allocation25_spill] sm:$0xff] %v3065_v21 }
  0xeb   : > { %922 = vperm.xlu1 %2500, %v2848_v23   ;;  %371 = vperm.xlu0 %2503, %v2869_v26  }
  0xec   : > { %v3071_v38 = vpop.permute.xlu1 %554  ;;  %v3073_v1 = vpop.permute.xlu0 %758 }
  0xef   : > { %930 = vperm.xlu1 %2500, %v2855_v24   ;;  %381 = vperm.xlu0 %2503, %v2876_v27  }
  0xf0   : > { %v3077_v4 = vpop.permute.xlu1 %562  ;;  %v3079_v22 = vpop.permute.xlu0 %766 }
  0xf1   : > { %4278 = vst [vmem:[#allocation26_spill] sm:$0xff] %v3079_v22 }
  0xf3   : > { %938 = vperm.xlu1 %2500, %v2862_v25   ;;  %391 = vperm.xlu0 %2503, %v2883_v28  }
  0xf4   : > { %v3083_v9 = vpop.permute.xlu1 %570  ;;  %v3085_v23 = vpop.permute.xlu0 %774 }
  0xf5   : > { %4279 = vst [vmem:[#allocation27_spill] sm:$0xff] %v3083_v9  ;;  %4280 = vst [vmem:[#allocation28_spill] sm:$0xff] %v3085_v23 }
  0xf7   : > { %946 = vperm.xlu1 %2500, %v2869_v26   ;;  %401 = vperm.xlu0 %2503, %v2890_v29  }
  0xf8   : > { %v3089_v8 = vpop.permute.xlu1 %578  ;;  %v3091_v24 = vpop.permute.xlu0 %782 }
  0xf9   : > { %4281 = vst [vmem:[#allocation29_spill] sm:$0xff] %v3089_v8  ;;  %4282 = vst [vmem:[#allocation30_spill] sm:$0xff] %v3091_v24 }
  0xfb   : > { %954 = vperm.xlu1 %2500, %v2876_v27   ;;  %411 = vperm.xlu0 %2503, %v2897_v30  }
  0xfc   : > { %v3095_v22 = vpop.permute.xlu1 %586  ;;  %v3097_v25 = vpop.permute.xlu0 %790 }
  0xfd   : > { %4283 = vst [vmem:[#allocation31_spill] sm:$0xff] %v3095_v22  ;;  %4284 = vst [vmem:[#allocation32_spill] sm:$0xff] %v3097_v25 }
  0xff   : > { %962 = vperm.xlu1 %2500, %v2883_v28   ;;  %421 = vperm.xlu0 %2503, %v2904_v31  }
 0x100   : > { %v3101_v9 = vpop.permute.xlu1 %594  ;;  %v3103_v26 = vpop.permute.xlu0 %798 }
 0x101   : > { %4285 = vst [vmem:[#allocation33_spill] sm:$0xff] %v3101_v9  ;;  %4286 = vst [vmem:[#allocation34_spill] sm:$0xff] %v3103_v26  ;;  %v1097_v9 = vld [vmem:[%s4244_s2 + $0x20] sm:$0xff] }
 0x103   : > { %970 = vperm.xlu1 %2500, %v2890_v29   ;;  %431 = vperm.xlu0 %2503, %v2911_v32  }
 0x104   : > { %v3107_v23 = vpop.permute.xlu1 %602  ;;  %v3109_v27 = vpop.permute.xlu0 %806 }
 0x105   : > { %4287 = vst [vmem:[#allocation35_spill] sm:$0xff] %v3107_v23  ;;  %4288 = vst [vmem:[#allocation36_spill] sm:$0xff] %v3109_v27  ;;  %v1402_v23 = vld [vmem:[%s4246_s4 + $0x28] sm:$0xff] }
 0x107   : > { %978 = vperm.xlu1 %2500, %v2897_v30   ;;  %441 = vperm.xlu0 %2503, %v2918_v33   ;;  %v1123_v30 = vld [vmem:[%s4244_s2 + $0xf0] sm:$0xff] }
 0x108   : > { %v3113_v8 = vpop.permute.xlu1 %610  ;;  %v3115_v28 = vpop.permute.xlu0 %814 }
 0x10b   : > { %986 = vperm.xlu1 %2500, %v2904_v31   ;;  %451 = vperm.xlu0 %2503, %v2925_v34   ;;  %v1108_v31 = vld [vmem:[%s4244_s2 + $0x78] sm:$0xff] }
 0x10c   : > { %v3119_v11 = vpop.permute.xlu1 %618  ;;  %v3121_v29 = vpop.permute.xlu0 %822 }
 0x10f   : > { %994 = vperm.xlu1 %2500, %v2911_v32   ;;  %461 = vperm.xlu0 %2503, %v2932_v35   ;;  %v1105_v35 = vld [vmem:[%s4244_s2 + $0x60] sm:$0xff] }
 0x110   : > { %v3125_v24 = vpop.permute.xlu1 %626 }
 0x111   : > { %v3130_v12 = vpop.permute.xlu0 %898 }
 0x112   : > { %4289 = vst [vmem:[#allocation37_spill] sm:$0xff] %v3130_v12 }
 0x113   : > { %1022 = vperm.xlu1 %2500, %v2827_v19   ;;  %1277 = vperm.xlu0 %2503, %v1123_v30   ;;  %v1124_v19 = vld [vmem:[%s4244_s2 + $0xf8] sm:$0xff]  ;;  %v4294_v30 = vmov 0  }
 0x115   : > { %v3136_v34 = vpop.permute.xlu1 %702  ;;  %v3138_v32 = vpop.permute.xlu0 %910 }
 0x116   : > { %4290 = vst [vmem:[#allocation38_spill] sm:$0xff] %v3136_v34  ;;  %4291 = vst [vmem:[#allocation39_spill] sm:$0xff] %v3138_v32  ;;  %v1107_v32 = vld [vmem:[%s4244_s2 + $0x70] sm:$0xff] }
 0x117   : > { %1014 = vperm.xlu1 %2500, %v2820_v18   ;;  %1202 = vperm.xlu0 %2503, %v1108_v31   ;;  %v1119_v18 = vld [vmem:[%s4244_s2 + $0xd0] sm:$0xff] }
 0x119   : > { %v3144_v10 = vpop.permute.xlu1 %710  ;;  %v3146_v12 = vpop.permute.xlu0 %918 }
 0x11a   : > { %4292 = vst [vmem:[#allocation40_spill] sm:$0xff] %v3144_v10  ;;  %4293 = vst [vmem:[#allocation41_spill] sm:$0xff] %v3146_v12  ;;  %v1103_v10 = vld [vmem:[%s4244_s2 + $0x50] sm:$0xff]  ;;  %v4299_v12 = vmov 3  }
 0x11b   : > { %2501 = vset.pattern.permute.xlu1 %v4294_v30  ;;  %1187 = vperm.xlu0 %2503, %v1105_v35  }
 0x11c   : > { %1282 = vperm.xlu1 %2501, %v1124_v19  }
 0x11d   : > { %v3155_v31 = vpop.permute.xlu1 %714  ;;  %v3157_v34 = vpop.permute.xlu0 %926 }
 0x11e   : > { %4295 = vst [vmem:[#allocation42_spill] sm:$0xff] %v3155_v31  ;;  %4296 = vst [vmem:[#allocation43_spill] sm:$0xff] %v3157_v34  ;;  %v1117_v31 = vld [vmem:[%s4244_s2 + $0xc0] sm:$0xff] }
 0x11f   : > { %1257 = vperm.xlu0 %2503, %v1119_v18   ;;  %v1121_v18 = vld [vmem:[%s4244_s2 + $0xe0] sm:$0xff] }
 0x120   : > { %1197 = vperm.xlu1 %2501, %v1107_v32  }
 0x121   : > { %v3165_v35 = vpop.permute.xlu1 %722  ;;  %v3167_v19 = vpop.permute.xlu0 %934 }
 0x122   : > { %4297 = vst [vmem:[#allocation44_spill] sm:$0xff] %v3165_v35  ;;  %4298 = vst [vmem:[#allocation45_spill] sm:$0xff] %v3167_v19  ;;  %v1113_v19 = vld [vmem:[%s4244_s2 + $0xa0] sm:$0xff] }
 0x123   : > { %1177 = vperm.xlu0 %2503, %v1103_v10   ;;  %v1101_v10 = vld [vmem:[%s4244_s2 + $0x40] sm:$0xff] }
 0x124   : > { %2502 = vset.pattern.permute.xlu1 %v4299_v12 }
 0x125   : > { %1002 = vperm.xlu1 %2502, %v2918_v33   ;;  %v3174_v34 = vpop.permute.xlu1 %730  ;;  %v3176_v32 = vpop.permute.xlu0 %942  ;;  %v1122_v33 = vld [vmem:[%s4244_s2 + $0xe8] sm:$0xff] }
 0x126   : > { %4300 = vst [vmem:[#allocation46_spill] sm:$0xff] %v3174_v34  ;;  %4301 = vst [vmem:[#allocation47_spill] sm:$0xff] %v3176_v32 }
 0x127   : > { %1247 = vperm.xlu0 %2503, %v1117_v31   ;;  %v1115_v31 = vld [vmem:[%s4244_s2 + $0xb0] sm:$0xff] }
 0x129   : > { %2504 = vset.pattern.permute.xlu1 %v4294_v30  ;;  %v3185_v35 = vpop.permute.xlu1 %738  ;;  %v3187_v22 = vpop.permute.xlu0 %950 }
 0x12a   : > { %4302 = vst [vmem:[#allocation48_spill] sm:$0xff] %v3185_v35  ;;  %1267 = vperm.xlu1 %2504, %v1121_v18   ;;  %v1099_v18 = vld [vmem:[%s4244_s2 + $0x30] sm:$0xff] }
 0x12b   : > { %1167 = vperm.xlu0 %2503, %v1101_v10  }
 0x12d   : > { %v3195_v34 = vpop.permute.xlu1 %746  ;;  %v3197_v25 = vpop.permute.xlu0 %958 }
 0x12e   : > { %4303 = vst [vmem:[#allocation49_spill] sm:$0xff] %v3195_v34  ;;  %1272 = vperm.xlu1 %2504, %v1122_v33  }
 0x12f   : > { %1237 = vperm.xlu0 %2503, %v1115_v31  }
 0x131   : > { %v3205_v10 = vpop.permute.xlu1 %754  ;;  %v3207_v13 = vpop.permute.xlu0 %966 }
 0x132   : > { %4304 = vst [vmem:[#allocation50_spill] sm:$0xff] %v3207_v13  ;;  %1192 = vperm.xlu1 %2504, %v1106_v2  }
 0x133   : > { %1157 = vperm.xlu0 %2503, %v1099_v18   ;;  %v1120_v18 = vld [vmem:[%s4244_s2 + $0xd8] sm:$0xff] }
 0x135   : > { %v3212_v33 = vpop.permute.xlu1 %762  ;;  %v3214_v31 = vpop.permute.xlu0 %974 }
 0x136   : > { %4305 = vst [vmem:[#allocation51_spill] sm:$0xff] %v3214_v31  ;;  %2505 = vset.pattern.permute.xlu1 %v4299_v12  ;;  %v1118_v31 = vld [vmem:[%s4244_s2 + $0xc8] sm:$0xff] }
 0x137   : > { %998 = vperm.xlu1 %2505, %v2806_v16   ;;  %1227 = vperm.xlu0 %2503, %v1113_v19   ;;  %v1111_v16 = vld [vmem:[%s4244_s2 + $0x90] sm:$0xff] }
 0x139   : > { %v3221_v13 = vpop.permute.xlu1 %770  ;;  %v3223_v2 = vpop.permute.xlu0 %982 }
 0x13a   : > { %4306 = vst [vmem:[#allocation52_spill] sm:$0xff] %v3221_v13  ;;  %4307 = vst [vmem:[#allocation53_spill] sm:$0xff] %v3223_v2  ;;  %v1104_v13 = vld [vmem:[%s4244_s2 + $0x58] sm:$0xff]  ;;  %v1102_v2 = vld [vmem:[%s4244_s2 + $0x48] sm:$0xff] }
 0x13b   : > { %2506 = vset.pattern.permute.xlu1 %v4294_v30  ;;  %1147 = vperm.xlu0 %2503, %v1097_v9   ;;  %v1095_v30 = vld [vmem:[%s4244_s2 + $0x10] sm:$0xff] }
 0x13c   : > { %1262 = vperm.xlu1 %2506, %v1120_v18  }
 0x13d   : > { %v3232_v12 = vpop.permute.xlu1 %778  ;;  %v3234_v19 = vpop.permute.xlu0 %990 }
 0x13e   : > { %4308 = vst [vmem:[#allocation54_spill] sm:$0xff] %v3232_v12  ;;  %4309 = vst [vmem:[#allocation55_spill] sm:$0xff] %v3234_v19  ;;  %v1109_v12 = vld [vmem:[%s4244_s2 + $0x80] sm:$0xff]  ;;  %v1116_v19 = vld [vmem:[%s4244_s2 + $0xb8] sm:$0xff] }
 0x13f   : > { %1217 = vperm.xlu0 %2503, %v1111_v16  }
 0x140   : > { %1182 = vperm.xlu1 %2506, %v1104_v13  }
 0x141   : > { %v3242_v9 = vpop.permute.xlu1 %786  ;;  %v3244_v18 = vpop.permute.xlu0 %1018 }
 0x142   : > { %4310 = vst [vmem:[#allocation56_spill] sm:$0xff] %v3242_v9  ;;  %v1093_v9 = vld [vmem:[%s4244_s2] sm:$0xff] }
 0x143   : > { %1137 = vperm.xlu0 %2503, %v1095_v30  }
 0x144   : > { %1252 = vperm.xlu1 %2506, %v1118_v31  }
 0x145   : > { %v3252_v16 = vpop.permute.xlu1 %794  ;;  %v3254_v13 = vpop.permute.xlu0 %1010 }
 0x146   : > { %4311 = vst [vmem:[#allocation57_spill] sm:$0xff] %v3252_v16  ;;  %v1397_v16 = vld [vmem:[%s4246_s4] sm:$0xff] }
 0x147   : > { %1207 = vperm.xlu0 %2503, %v1109_v12  }
 0x148   : > { %1172 = vperm.xlu1 %2506, %v1102_v2   ;;  %v1100_v2 = vld [vmem:[%s4244_s2 + $0x38] sm:$0xff] }
 0x149   : > { %v3262_v30 = vpop.permute.xlu1 %802  ;;  %v3264_v31 = vpop.permute.xlu0 %1006 }
 0x14a   : > { %4312 = vst [vmem:[#allocation58_spill] sm:$0xff] %v3262_v30  ;;  %4313 = vst [vmem:[#allocation59_spill] sm:$0xff] %v3264_v31  ;;  %v1399_v30 = vld [vmem:[%s4246_s4 + $0x10] sm:$0xff] }
 0x14b   : > { %1127 = vperm.xlu0 %2503, %v1093_v9  }
 0x14c   : > { %1242 = vperm.xlu1 %2506, %v1116_v19   ;;  %v1114_v19 = vld [vmem:[%s4244_s2 + $0xa8] sm:$0xff] }
 0x14d   : > { %v3272_v12 = vpop.permute.xlu1 %810 }
 0x14e   : > { %4314 = vst [vmem:[#allocation60_spill] sm:$0xff] %v3272_v12  ;;  %v3277_v14 = vpop.permute.xlu0 %311 }
 0x14f   : > { %4315 = vst [vmem:[#allocation61_spill] sm:$0xff] %v3277_v14  ;;  %1431 = vperm.xlu0 %2503, %v1397_v16   ;;  %v1401_v14 = vld [vmem:[%s4246_s4 + $0x20] sm:$0xff] }
 0x150   : > { %1162 = vperm.xlu1 %2506, %v1100_v2   ;;  %v1098_v2 = vld [vmem:[%s4244_s2 + $0x28] sm:$0xff] }
 0x151   : > { %v3282_v9 = vpop.permute.xlu1 %818 }
 0x152   : > { %v3287_v35 = vpop.permute.xlu0 %316 }
 0x153   : > { %4316 = vst [vmem:[#allocation62_spill] sm:$0xff] %v3287_v35  ;;  %1441 = vperm.xlu0 %2503, %v1399_v30   ;;  %v1403_v35 = vld [vmem:[%s4246_s4 + $0x30] sm:$0xff]  ;;  %v1112_v30 = vld [vmem:[%s4244_s2 + $0x98] sm:$0xff] }
 0x154   : > { %1232 = vperm.xlu1 %2506, %v1114_v19  }
 0x155   : > { %v3292_v16 = vpop.permute.xlu1 %826 }
 0x156   : > { %v3297_v26 = vpop.permute.xlu0 %331 }
 0x157   : > { %4317 = vst [vmem:[#allocation63_spill] sm:$0xff] %v3297_v26  ;;  %1451 = vperm.xlu0 %2503, %v1401_v14   ;;  %v1405_v26 = vld [vmem:[%s4246_s4 + $0x40] sm:$0xff]  ;;  %v1096_v14 = vld [vmem:[%s4244_s2 + $0x18] sm:$0xff] }
 0x158   : > { %1152 = vperm.xlu1 %2506, %v1098_v2  }
 0x15a   : > { %v3305_v19 = vpop.permute.xlu1 %902  ;;  %v3307_v15 = vpop.permute.xlu0 %341 }
 0x15b   : > { %4318 = vst [vmem:[#allocation64_spill] sm:$0xff] %v3305_v19  ;;  %4319 = vst [vmem:[#allocation65_spill] sm:$0xff] %v3307_v15  ;;  %1461 = vperm.xlu0 %2503, %v1403_v35   ;;  %v1407_v19 = vld [vmem:[%s4246_s4 + $0x50] sm:$0xff]  ;;  %v1110_v35 = vld [vmem:[%s4244_s2 + $0x88] sm:$0xff] }
 0x15c   : > { %1222 = vperm.xlu1 %2506, %v1112_v30  }
 0x15e   : > { %v3315_v2 = vpop.permute.xlu1 %906  ;;  %v3317_v32 = vpop.permute.xlu0 %351 }
 0x15f   : > { %4320 = vst [vmem:[#allocation66_spill] sm:$0xff] %v3315_v2  ;;  %4321 = vst [vmem:[#allocation67_spill] sm:$0xff] %v3317_v32  ;;  %1471 = vperm.xlu0 %2503, %v1405_v26   ;;  %v1409_v2 = vld [vmem:[%s4246_s4 + $0x60] sm:$0xff]  ;;  %v1094_v26 = vld [vmem:[%s4244_s2 + $0x8] sm:$0xff] }
 0x160   : > { %1142 = vperm.xlu1 %2506, %v1096_v14  }
 0x162   : > { %v3325_v30 = vpop.permute.xlu1 %914  ;;  %v3327_v15 = vpop.permute.xlu0 %361 }
 0x163   : > { %4322 = vst [vmem:[#allocation68_spill] sm:$0xff] %v3325_v30  ;;  %4323 = vst [vmem:[#allocation69_spill] sm:$0xff] %v3327_v15  ;;  %1481 = vperm.xlu0 %2503, %v1407_v19   ;;  %v1411_v30 = vld [vmem:[%s4246_s4 + $0x70] sm:$0xff]  ;;  %v1398_v19 = vld [vmem:[%s4246_s4 + $0x8] sm:$0xff] }
 0x164   : > { %1212 = vperm.xlu1 %2506, %v1110_v35  }
 0x166   : > { %v3335_v14 = vpop.permute.xlu1 %922  ;;  %v3337_v32 = vpop.permute.xlu0 %371 }
 0x167   : > { %4324 = vst [vmem:[#allocation70_spill] sm:$0xff] %v3335_v14  ;;  %1491 = vperm.xlu0 %2503, %v1409_v2   ;;  %v2509_v14 = vld [vmem:[%s4245_s3 + $0x4] ss:$8 sps:$4 sm:$0xff]  }
 0x168   : > { %1132 = vperm.xlu1 %2506, %v1094_v26   ;;  %v1413_v2 = vld [vmem:[%s4246_s4 + $0x80] sm:$0xff]  ;;  %1781 = vmatprep.mubr.bf16.mxu0 %v2509_v14 }
 0x169   : > { %v2512_v26 = vld [vmem:[%s4245_s3 + $0x84] ss:$8 sps:$4 sm:$0xff]  }
 0x16a   : > { %v3345_v35 = vpop.permute.xlu1 %930  ;;  %v3347_v31 = vpop.permute.xlu0 %381  ;;  %1845 = vmatprep.mubr.bf16.mxu1 %v2512_v26 }
 0x16b   : > { %4325 = vst [vmem:[#allocation71_spill] sm:$0xff] %v3345_v35  ;;  %1501 = vperm.xlu0 %2503, %v1411_v30   ;;  %v1400_v35 = vld [vmem:[%s4246_s4 + $0x18] sm:$0xff] }
 0x16c   : > { %1436 = vperm.xlu1 %2506, %v1398_v19   ;;  %v1415_v19 = vld [vmem:[%s4246_s4 + $0x90] sm:$0xff] }
 0x16e   : > { %v3361_v17 = vpop.permute.xlu1 %938  ;;  %v3363_v30 = vpop.permute.xlu0 %391 }
 0x16f   : > { %4326 = vst [vmem:[#allocation72_spill] sm:$0xff] %v3361_v17  ;;  %4327 = vst [vmem:[#allocation73_spill] sm:$0xff] %v3363_v30  ;;  %1511 = vperm.xlu0 %2503, %v1413_v2   ;;  %v1417_v2 = vld [vmem:[%s4246_s4 + $0xa0] sm:$0xff] }
 0x170   : > { %1446 = vperm.xlu1 %2506, %v1400_v35   ;;  %v1404_v35 = vld [vmem:[%s4246_s4 + $0x38] sm:$0xff] }
 0x172   : > { %v3371_v56 = vpop.permute.xlu1 %946  ;;  %v3373_v14 = vpop.permute.xlu0 %401 }
 0x173   : > { %4328 = vst [vmem:[#allocation74_spill] sm:$0xff] %v3373_v14  ;;  %1521 = vperm.xlu0 %2503, %v1415_v19   ;;  %v1419_v19 = vld [vmem:[%s4246_s4 + $0xb0] sm:$0xff] }
 0x174   : > { %1456 = vperm.xlu1 %2506, %v1402_v23   ;;  %v1406_v23 = vld [vmem:[%s4246_s4 + $0x48] sm:$0xff] }
 0x176   : > { %v3381_v26 = vpop.permute.xlu1 %954  ;;  %v3383_v30 = vpop.permute.xlu0 %411 }
 0x177   : > { %4329 = vst [vmem:[#allocation75_spill] sm:$0xff] %v3383_v30  ;;  %1531 = vperm.xlu0 %2503, %v1417_v2   ;;  %v1421_v2 = vld [vmem:[%s4246_s4 + $0xc0] sm:$0xff]  ;;  %v1408_v30 = vld [vmem:[%s4246_s4 + $0x58] sm:$0xff] }
 0x178   : > { %1466 = vperm.xlu1 %2506, %v1404_v35   ;;  %v469_v35 = vlaneseq }
 0x17a   : > { %v3392_v14 = vpop.permute.xlu1 %962  ;;  %v3394_v17 = vpop.permute.xlu0 %421 }
 0x17b   : > { %4330 = vst [vmem:[#allocation76_spill] sm:$0xff] %v3392_v14  ;;  %4331 = vst [vmem:[#allocation77_spill] sm:$0xff] %v3394_v17  ;;  %1541 = vperm.xlu0 %2503, %v1419_v19   ;;  %v1423_v19 = vld [vmem:[%s4246_s4 + $0xd0] sm:$0xff]  ;;  %v1410_v14 = vld [vmem:[%s4246_s4 + $0x68] sm:$0xff] }
 0x17c   : > { %1476 = vperm.xlu1 %2506, %v1406_v23   ;;  %v3410_v23 = vshrl.u32 %v469_v35, 7 }
 0x17e   : > { %v3403_v34 = vpop.permute.xlu1 %970  ;;  %v3405_v62 = vpop.permute.xlu0 %431  ;;  %4334 = vst [vmem:[#allocation80_spill] sm:$0xff] %v3410_v23  ;;  %v635_v35 = vsub.s32 1, %v3410_v23  ;;  %v1027_v58 = vsub.s32 3, %v3410_v23 }
 0x17f   : > { %4332 = vst [vmem:[#allocation78_spill] sm:$0xff] %v3403_v34  ;;  %4333 = vst [vmem:[#allocation79_spill] sm:$0xff] %v3405_v62  ;;  %1551 = vperm.xlu0 %2503, %v1421_v2   ;;  %v4254_v2 = vsub.s32 0, %v3410_v23  ;;  %v1412_v34 = vld [vmem:[%s4246_s4 + $0x78] sm:$0xff] }
 0x180   : > { %1486 = vperm.xlu1 %2506, %v1408_v30   ;;  %v1425_v30 = vld [vmem:[%s4246_s4 + $0xe0] sm:$0xff] }
 0x182   : > { %v3415_v17 = vpop.permute.xlu1 %978  ;;  %v3417_v61 = vpop.permute.xlu0 %441 }
 0x183   : > { %4335 = vst [vmem:[#allocation81_spill] sm:$0xff] %v3415_v17  ;;  %1561 = vperm.xlu0 %2503, %v1423_v19   ;;  %v276_v17 = vld [vmem:[%s274_s9] sm:$0xf]  ;;  %v831_v19 = vsub.s32 2, %v3410_v23  ;;  %s2228_s9 = sshll.u32 %s270_s30, 4  ;;  %s2229_s9 = int_to_ptr.vmem [resolvable:$true] %s2228_s9 }
 0x184   : > { %1496 = vperm.xlu1 %2506, %v1410_v14   ;;  %v1942_v14 = vld [vmem:[%s4247_s5] sm:$0xff]  ;;  %v3440_v60 = vrot.slane %v276_v17, %v4254_v2  ;;  %v3442_v59 = vrot.slane %v276_v17, %v635_v35  ;;  %v1944_v35 = vld [vmem:[%s4247_s5 + $0x10] sm:$0xff]  ;;  %v3460_v23 = vrot.slane %v276_v17, %v1027_v58  ;;  %s2555_s17 = scalar_lea.vmem %s2229_s9, 16  ;;  %p2562_p0 = scmp.lt.s32.totalorder %s2229_s9, %s2560_s18 }
 0x185   : > { %p2556_p11 = scmp.ne.s32.totalorder %s2229_s9, %s2555_s17  ;;  %p2563_p1 = scmp.lt.s32.totalorder %s2561_s19, %s2555_s17 }
 0x186   : > { %v3430_v62 = vpop.permute.xlu1 %986  ;;  %v3432_v21 = vpop.permute.xlu0 %451  ;;  %v667_v12 = vmul.f32 %v3442_v59, %v3125_v24  ;;  %v488_v24 = vmul.f32 %v3440_v60, %v2979_v51  ;;  %v1059_v51 = vmul.f32 %v3460_v23, %v3244_v18 }
 0x187   : > { %4336 = vst [vmem:[#allocation82_spill] sm:$0xff] %v3430_v62  ;;  %1571 = vperm.xlu0 %2503, %v1425_v30   ;;  %v1414_v62 = vld [vmem:[%s4246_s4 + $0x88] sm:$0xff]  ;;  %p2557_p12 = pnand %p2556_p11, %p2703_p5  ;;  %p2564_p2 = por %p2563_p1, %p2562_p0 }
 0x188   : > { %1506 = vperm.xlu1 %2506, %v1412_v34   ;;  %v3450_v34 = vrot.slane %v276_v17, %v831_v19  ;;  %v1416_v19 = vld [vmem:[%s4246_s4 + $0x98] sm:$0xff]  ;;  %v487_v17 = vmul.f32 %v3440_v60, %v3347_v31 }
 0x189   : > { %p2558_p13 = pneg %p2557_p12 }
 0x18a   : > { %v3448_v15 = vpop.permute.xlu1 %994  ;;  %v462_v30 = vpop.permute.xlu0 %461  ;;  %v863_v2 = vmul.f32 %v3450_v34, %v3121_v29  ;;  %v847_v0 = vmul.f32 %v3450_v34, %v3073_v1  ;;  %v1950_v1 = vld [vmem:[%s4247_s5 + $0x40] sm:$0xff] }
 0x18b   : > { %4337 = vst [vmem:[#allocation83_spill] sm:$0xff] %v3448_v15  ;;  %v503_v27 = vmul.f32 %v3440_v60, %v462_v30  ;;  %1976 = vperm.xlu0 %2503, %v1942_v14   ;;  %v504_v14 = vmul.f32 %v3440_v60, %v3027_v6  ;;  %v668_v30 = vmul.f32 %v3442_v59, %v3029_v7  ;;  %v1946_v6 = vld [vmem:[%s4247_s5 + $0x20] sm:$0xff]  ;;  %p2565_p3 = pnand %p2564_p2, %p2558_p13 }
 0x18c   : > { %1516 = vperm.xlu1 %2506, %v1414_v62   ;;  %v652_v62 = vmul.f32 %v3442_v59, %v2981_v52  ;;  %v864_v52 = vmul.f32 %v3450_v34, %v3292_v16  ;;  %v651_v7 = vmul.f32 %v3442_v59, %v3077_v4  ;;  %v1948_v4 = vld [vmem:[%s4247_s5 + $0x30] sm:$0xff] }
 0x18d   : > { %v699_v15 = vadd.f32 %v667_v12, %v503_v27  ;;  %v848_v12 = vmul.f32 %v3450_v34, %v3212_v33  ;;  %v700_v33 = vadd.f32 %v668_v30, %v504_v14  ;;  %v1044_v14 = vmul.f32 %v3460_v23, %v3197_v25 }
 0x18e   : > { %v1023_v29 = vpop.permute.xlu1 %1022  ;;  %v1278_v58 = vpop.permute.xlu0 %1277  ;;  %v684_v31 = vadd.f32 %v652_v62, %v488_v24  ;;  %v1043_v24 = vmul.f32 %v3460_v23, %v3381_v26  ;;  %v1420_v62 = vld [vmem:[%s4246_s4 + $0xb8] sm:$0xff] }
 0x18f   : > { %v895_v27 = vadd.f32 %v863_v2, %v699_v15  ;;  %1986 = vperm.xlu0 %2503, %v1944_v35   ;;  %v1418_v15 = vld [vmem:[%s4246_s4 + $0xa8] sm:$0xff]  ;;  %v1060_v2 = vmul.f32 %v3460_v23, %v1023_v29  ;;  %v896_v55 = vadd.f32 %v864_v52, %v700_v33  ;;  %v1952_v33 = vld [vmem:[%s4247_s5 + $0x50] sm:$0xff] }
 0x190   : > { %1526 = vperm.xlu1 %2506, %v1416_v19   ;;  %v683_v19 = vadd.f32 %v651_v7, %v487_v17  ;;  %v880_v57 = vadd.f32 %v848_v12, %v684_v31 }
 0x191   : > { %v1091_v18 = vadd.f32 %v1059_v51, %v895_v27  ;;  %v1092_v29 = vadd.f32 %v1060_v2, %v896_v55  ;;  %v501_v55 = vmul.f32 %v3440_v60, %v3432_v21  ;;  %v1424_v21 = vld [vmem:[%s4246_s4 + $0xd8] sm:$0xff] }
 0x192   : > { %v3490_v35 = vpop.permute.xlu1 %1014  ;;  %v1203_v16 = vpop.permute.xlu0 %1202  ;;  %v879_v12 = vadd.f32 %v847_v0, %v683_v19  ;;  %v1076_v51 = vadd.f32 %v1044_v14, %v880_v57  ;;  %v665_v57 = vmul.f32 %v3442_v59, %v3119_v11  ;;  %v3526_v11 = vmul.f32 %v3440_v60, %v2936_v36 }
 0x193   : > { %1996 = vperm.xlu0 %2503, %v1946_v6   ;;  %v1315_v30 = vadd.f32 %v1278_v58, %v1091_v18  ;;  %v1422_v6 = vld [vmem:[%s4246_s4 + $0xc8] sm:$0xff]  ;;  %v666_v14 = vmul.f32 %v3442_v59, %v3023_v5  ;;  %v485_v36 = vmul.f32 %v3440_v60, %v3337_v32  ;;  %v642_v5 = vmul.f32 %v3442_v59, %v2951_v42 }
 0x194   : > { %1536 = vperm.xlu1 %2506, %v1418_v15   ;;  %v1075_v26 = vadd.f32 %v1043_v24, %v879_v12  ;;  %v1300_v58 = vadd.f32 %v1203_v16, %v1076_v51  ;;  %v697_v18 = vadd.f32 %v665_v57, %v501_v55  ;;  %v640_v24 = vmul.f32 %v3442_v59, %v2945_v40  ;;  %v1954_v40 = vld [vmem:[%s4247_s5 + $0x60] sm:$0xff] }
 0x195   : > { %v1347_v25 = vmax.f32 %v1315_v30, 0.0  ;;  %v861_v30 = vmul.f32 %v3450_v34, %v3115_v28  ;;  %v486_v28 = vmul.f32 %v3440_v60, %v2973_v49  ;;  %v650_v32 = vmul.f32 %v3442_v59, %v2975_v50 }
 0x196   : > { %v3504_v17 = vpop.permute.xlu0 %1187  ;;  %v1332_v16 = vmax.f32 %v1300_v58, 0.0  ;;  %v649_v12 = vmul.f32 %v3442_v59, %v3071_v38  ;;  %v862_v51 = vmul.f32 %v3450_v34, %v3282_v9  ;;  %v480_v42 = vmul.f32 %v3440_v60, %v2955_v43 }
 0x197   : > { %v1283_v27 = vpop.permute.xlu1 %1282  ;;  %2006 = vperm.xlu0 %2503, %v1948_v4   ;;  %v476_v4 = vmul.f32 %v3440_v60, %v2943_v39  ;;  %v644_v49 = vmul.f32 %v3442_v59, %v2957_v44  ;;  %v482_v50 = vmul.f32 %v3440_v60, %v2961_v45  ;;  %v1057_v9 = vmul.f32 %v3460_v23, %v3254_v13  ;;  %v1956_v44 = vld [vmem:[%s4247_s5 + $0x70] sm:$0xff] }
 0x198   : > { %v1316_v52 = vadd.f32 %v1283_v27, %v1092_v29  ;;  %1546 = vperm.xlu1 %2506, %v1420_v62   ;;  %v502_v62 = vmul.f32 %v3440_v60, %v3021_v3  ;;  %v478_v3 = vmul.f32 %v3440_v60, %v2949_v41  ;;  %v1426_v27 = vld [vmem:[%s4246_s4 + $0xe8] sm:$0xff]  ;;  %v893_v41 = vadd.f32 %v861_v30, %v697_v18 }
 0x199   : > { %v1058_v43 = vmul.f32 %v3460_v23, %v3490_v35  ;;  %v646_v45 = vmul.f32 %v3442_v59, %v2963_v46  ;;  %v682_v55 = vadd.f32 %v650_v32, %v486_v28  ;;  %v1943_v35 = vld [vmem:[%s4247_s5 + $0x8] sm:$0xff] }
 0x19a   : > { %v1348_v7 = vmax.f32 %v1316_v52, 0.0  ;;  %v3519_v2 = vpop.permute.xlu0 %1257  ;;  %v846_v52 = vmul.f32 %v3450_v34, %v3205_v10  ;;  %v698_v38 = vadd.f32 %v666_v14, %v502_v62  ;;  %v484_v10 = vmul.f32 %v3440_v60, %v2967_v47 }
 0x19b   : > { %v1198_v15 = vpop.permute.xlu1 %1197  ;;  %2016 = vperm.xlu0 %2503, %v1950_v1   ;;  %v1089_v46 = vadd.f32 %v1057_v9, %v893_v41  ;;  %v3592_v47 = vmul.f32 %v3442_v59, %v2938_v37  ;;  %v3605_v37 = vadd.f32 %v646_v45, %v482_v50  ;;  %v663_v62 = vmul.f32 %v3442_v59, %v3113_v8  ;;  %v1960_v8 = vld [vmem:[%s4247_s5 + $0x90] sm:$0xff]  ;;  %v1947_v50 = vld [vmem:[%s4247_s5 + $0x28] sm:$0xff] }
 0x19c   : > { %v1299_v0 = vadd.f32 %v1198_v15, %v1075_v26  ;;  %1556 = vperm.xlu1 %2506, %v1422_v6   ;;  %v1396_v31 = vpack.c.bf16 %v1348_v7, %v1347_v25  ;;  %v681_v26 = vadd.f32 %v649_v12, %v485_v36  ;;  %v648_v6 = vmul.f32 %v3442_v59, %v2969_v48 }
 0x19d   : > { %v845_v25 = vmul.f32 %v3450_v34, %v3067_v20  ;;  %v894_v58 = vadd.f32 %v862_v51, %v698_v38  ;;  %v1041_v7 = vmul.f32 %v3460_v23, %v3371_v56  ;;  %v3594_v15 = vadd.f32 %v640_v24, %v476_v4  ;;  %v1958_v56 = vld [vmem:[%s4247_s5 + $0x80] sm:$0xff]  ;;  %v1945_v4 = vld [vmem:[%s4247_s5 + $0x18] sm:$0xff] }
 0x19e   : > { %v1331_v19 = vmax.f32 %v1299_v0, 0.0  ;;  %2323 = vmatprep.subr.bf16.mxu0 %v1396_v31  ;;  %2435 = vmatprep.subr.bf16.mxu1 %v1396_v31  ;;  %v3568_v1 = vpop.permute.xlu0 %1177  ;;  %v3596_v48 = vadd.f32 %v642_v5, %v478_v3  ;;  %v878_v57 = vadd.f32 %v846_v52, %v682_v55  ;;  %v499_v0 = vmul.f32 %v3440_v60, %v3417_v61  ;;  %v4341_v51 = vld [vmem:[#allocation36_spill] sm:$0xff]  ;;  %v4343_v52 = vld [vmem:[#allocation69_spill] sm:$0xff]  ;;  %v4346_v55 = vld [vmem:[#allocation11_spill] sm:$0xff] }
 0x19f   : > { %2026 = vperm.xlu0 %2503, %v1952_v33   ;;  %v877_v31 = vadd.f32 %v845_v25, %v681_v26  ;;  %v1090_v33 = vadd.f32 %v1058_v43, %v894_v58  ;;  %v3607_v18 = vadd.f32 %v648_v6, %v484_v10  ;;  %v3618_v24 = vmul.f32 %v3440_v60, %v2985_v53  ;;  %v4345_v10 = vld [vmem:[#allocation10_spill] sm:$0xff]  ;;  %v4347_v58 = vld [vmem:[#allocation25_spill] sm:$0xff] }
 0x1a0   : > { %1566 = vperm.xlu1 %2506, %v1424_v21   ;;  %v3540_v29 = vpop.permute.xlu1 %1002  ;;  %v1388_v39 = vpack.c.bf16 %v1332_v16, %v1331_v19  ;;  %v3603_v21 = vadd.f32 %v644_v49, %v480_v42  ;;  %v1042_v16 = vmul.f32 %v3460_v23, %v3187_v22  ;;  %v3624_v36 = vmul.f32 %v3442_v59, %v2987_v54  ;;  %v4339_v54 = vld [vmem:[#allocation6_spill] sm:$0xff]  ;;  %v4342_v42 = vld [vmem:[#allocation60_spill] sm:$0xff] }
 0x1a1   : > { %v1073_v14 = vadd.f32 %v1041_v7, %v877_v31  ;;  %v500_v22 = vmul.f32 %v3440_v60, %v3015_v63  ;;  %v695_v5 = vadd.f32 %v663_v62, %v499_v0  ;;  %v4340_v63 = vld [vmem:[#allocation8_spill] sm:$0xff]  ;;  %v859_v41 = vmul.f32 %v3450_v34, %v4341_v51  ;;  %v1962_v0 = vld [vmem:[%s4247_s5 + $0xa0] sm:$0xff] }
 0x1a2   : > { %2324 = vmatpush3.bf16.msra.mxu0 %v1388_v39  ;;  %2443 = vmatpush3.bf16.msra.mxu1 %v1388_v39  ;;  %v3611_v19 = vpop.permute.xlu0 %1247  ;;  %v4338_v39 = vld [vmem:[#allocation14_spill] sm:$0xff]  ;;  %v1074_v3 = vadd.f32 %v1042_v16, %v878_v57  ;;  %v494_v12 = vmul.f32 %v3440_v60, %v4340_v63  ;;  %v483_v38 = vmul.f32 %v3440_v60, %v4343_v52  ;;  %v4348_v31 = vld [vmem:[#allocation12_spill] sm:$0xff]  ;;  %v4350_v16 = vld [vmem:[#allocation49_spill] sm:$0xff] }
 0x1a3   : > { %2036 = vperm.xlu0 %2503, %v1954_v40   ;;  %v664_v40 = vmul.f32 %v3442_v59, %v4338_v39  ;;  %v1297_v53 = vadd.f32 %v3504_v17, %v1073_v14  ;;  %v860_v17 = vmul.f32 %v3450_v34, %v4342_v42  ;;  %v1055_v9 = vmul.f32 %v3460_v23, %v3540_v29  ;;  %v1949_v14 = vld [vmem:[%s4247_s5 + $0x38] sm:$0xff] }
 0x1a4   : > { %1576 = vperm.xlu1 %2506, %v1426_v27   ;;  %v3636_v27 = vmul.f32 %v3440_v60, %v4339_v54  ;;  %v496_v6 = vmul.f32 %v3440_v60, %v4345_v10  ;;  %v647_v7 = vmul.f32 %v3442_v59, %v4347_v58  ;;  %v891_v29 = vadd.f32 %v859_v41, %v695_v5  ;;  %v4352_v5 = vld [vmem:[#allocation7_spill] sm:$0xff]  ;;  %v4354_v63 = vld [vmem:[#allocation24_spill] sm:$0xff] }
 0x1a5   : > { %v1268_v13 = vpop.permute.xlu1 %1267  ;;  %v843_v51 = vmul.f32 %v3450_v34, %v4354_v63  ;;  %v4355_v41 = vld [vmem:[#allocation59_spill] sm:$0xff] }
 0x1a6   : > { %v1313_v20 = vadd.f32 %v1268_v13, %v1089_v46  ;;  %v660_v13 = vmul.f32 %v3442_v59, %v4346_v55  ;;  %v3657_v25 = vpop.permute.xlu0 %1167  ;;  %v1329_v46 = vmax.f32 %v1297_v53, 0.0  ;;  %v1087_v39 = vadd.f32 %v1055_v9, %v891_v29  ;;  %v4358_v9 = vld [vmem:[#allocation67_spill] sm:$0xff] }
 0x1a7   : > { %2046 = vperm.xlu0 %2503, %v1956_v44   ;;  %v4344_v44 = vld [vmem:[#allocation9_spill] sm:$0xff]  ;;  %v3677_v53 = vmul.f32 %v3442_v59, %v4352_v5  ;;  %v1056_v42 = vmul.f32 %v3460_v23, %v4355_v41 }
 0x1a8   : > { %1981 = vperm.xlu1 %2506, %v1943_v35   ;;  %v1345_v28 = vmax.f32 %v1313_v20, 0.0  ;;  %v658_v45 = vmul.f32 %v3442_v59, %v4344_v44  ;;  %v696_v35 = vadd.f32 %v664_v40, %v500_v22  ;;  %v498_v20 = vmul.f32 %v3440_v60, %v4348_v31 }
 0x1a9   : > { %v1273_v61 = vpop.permute.xlu1 %1272  ;;  %v679_v22 = vadd.f32 %v647_v7, %v483_v38  ;;  %v1311_v55 = vadd.f32 %v3519_v2, %v1087_v39 }
 0x1aa   : > { %v1314_v30 = vadd.f32 %v1273_v61, %v1090_v33  ;;  %v4349_v33 = vld [vmem:[#allocation13_spill] sm:$0xff]  ;;  %v844_v61 = vmul.f32 %v3450_v34, %v4350_v16  ;;  %v3699_v44 = vpop.permute.xlu0 %1237 }
 0x1ab   : > { %2056 = vperm.xlu0 %2503, %v1958_v56   ;;  %v662_v56 = vmul.f32 %v3442_v59, %v4349_v33  ;;  %v4363_v33 = vld [vmem:[#allocation22_spill] sm:$0xff] }
 0x1ac   : > { %v1346_v32 = vmax.f32 %v1314_v30, 0.0  ;;  %1991 = vperm.xlu1 %2506, %v1945_v4   ;;  %v4351_v4 = vld [vmem:[#allocation79_spill] sm:$0xff]  ;;  %v892_v30 = vadd.f32 %v860_v17, %v696_v35  ;;  %v4356_v17 = vld [vmem:[#allocation72_spill] sm:$0xff]  ;;  %v876_v38 = vadd.f32 %v844_v61, %v3607_v18  ;;  %v4360_v18 = vld [vmem:[#allocation34_spill] sm:$0xff] }
 0x1ad   : > { %v1193_v49 = vpop.permute.xlu1 %1192  ;;  %v497_v62 = vmul.f32 %v3440_v60, %v4351_v4  ;;  %v694_v10 = vadd.f32 %v662_v56, %v498_v20  ;;  %v4359_v35 = vld [vmem:[#allocation23_spill] sm:$0xff]  ;;  %v857_v7 = vmul.f32 %v3450_v34, %v4360_v18  ;;  %v841_v20 = vmul.f32 %v3450_v34, %v4363_v33  ;;  %v1966_v4 = vld [vmem:[%s4247_s5 + $0xc0] sm:$0xff]  ;;  %v4373_v33 = vld [vmem:[#allocation32_spill] sm:$0xff] }
 0x1ae   : > { %v1395_v26 = vpack.c.bf16 %v1346_v32, %v1345_v28  ;;  %v1298_v43 = vadd.f32 %v1193_v49, %v1074_v3  ;;  %v3679_v28 = vadd.f32 %v658_v45, %v494_v12  ;;  %v3681_v32 = vadd.f32 %v660_v13, %v496_v6  ;;  %v1964_v12 = vld [vmem:[%s4247_s5 + $0xb0] sm:$0xff]  ;;  %v1951_v45 = vld [vmem:[%s4247_s5 + $0x48] sm:$0xff] }
 0x1af   : > { %2066 = vperm.xlu0 %2503, %v1960_v8   ;;  %v4353_v8 = vld [vmem:[#allocation35_spill] sm:$0xff]  ;;  %v1039_v49 = vmul.f32 %v3460_v23, %v4356_v17  ;;  %v875_v6 = vadd.f32 %v843_v51, %v679_v22  ;;  %v1088_v13 = vadd.f32 %v1056_v42, %v892_v30  ;;  %v645_v58 = vmul.f32 %v3442_v59, %v4359_v35  ;;  %v4366_v51 = vld [vmem:[#allocation33_spill] sm:$0xff] }
 0x1b0   : > { %v1330_v57 = vmax.f32 %v1298_v43, 0.0  ;;  %2001 = vperm.xlu1 %2506, %v1947_v50   ;;  %2325 = vmatprep.subr.bf16.mxu0 %v1395_v26  ;;  %v661_v54 = vmul.f32 %v3442_v59, %v4353_v8  ;;  %v4357_v50 = vld [vmem:[#allocation47_spill] sm:$0xff]  ;;  %v659_v41 = vmul.f32 %v3442_v59, %v4366_v51  ;;  %v4367_v42 = vld [vmem:[#allocation45_spill] sm:$0xff] }
 0x1b1   : > { %2436 = vmatprep.subr.bf16.mxu1 %v1395_v26  ;;  %v1040_v52 = vmul.f32 %v3460_v23, %v4357_v50  ;;  %v481_v26 = vmul.f32 %v3440_v60, %v4358_v9  ;;  %v4364_v56 = vld [vmem:[#allocation83_spill] sm:$0xff]  ;;  %v1071_v16 = vadd.f32 %v1039_v49, %v875_v6  ;;  %v1038_v17 = vmul.f32 %v3460_v23, %v4367_v42  ;;  %v3732_v50 = vpop.permute.xlu0 %1157 }
 0x1b2   : > { %v1387_v40 = vpack.c.bf16 %v1330_v57, %v1329_v46  ;;  %v999_v3 = vpop.permute.xlu1 %998  ;;  %v693_v43 = vadd.f32 %v661_v54, %v497_v62  ;;  %v4361_v46 = vld [vmem:[#allocation48_spill] sm:$0xff]  ;;  %v4362_v57 = vld [vmem:[#allocation58_spill] sm:$0xff]  ;;  %v1053_v2 = vmul.f32 %v3460_v23, %v4364_v56  ;;  %v1343_v54 = vmax.f32 %v1311_v55, 0.0 }
 0x1b3   : > { %2076 = vperm.xlu0 %2503, %v1962_v0   ;;  %v842_v29 = vmul.f32 %v3450_v34, %v4361_v46  ;;  %v858_v0 = vmul.f32 %v3450_v34, %v4362_v57  ;;  %v677_v62 = vadd.f32 %v645_v58, %v481_v26  ;;  %v1072_v39 = vadd.f32 %v1040_v52, %v876_v38  ;;  %v4368_v38 = vld [vmem:[#allocation71_spill] sm:$0xff]  ;;  %v4374_v56 = vld [vmem:[#allocation46_spill] sm:$0xff] }
 0x1b4   : > { %2011 = vperm.xlu1 %2506, %v1949_v14   ;;  %2326 = vmatpush3.bf16.msra.mxu0 %v1387_v40  ;;  %v4365_v14 = vld [vmem:[#allocation77_spill] sm:$0xff]  ;;  %v889_v22 = vadd.f32 %v857_v7, %v693_v43  ;;  %v1295_v5 = vadd.f32 %v3568_v1, %v1071_v16  ;;  %v1054_v8 = vmul.f32 %v3460_v23, %v999_v3  ;;  %v1968_v43 = vld [vmem:[%s4247_s5 + $0xd0] sm:$0xff]  ;;  %v1955_v35 = vld [vmem:[%s4247_s5 + $0x68] sm:$0xff] }
 0x1b5   : > { %2444 = vmatpush3.bf16.msra.mxu1 %v1387_v40  ;;  %v495_v30 = vmul.f32 %v3440_v60, %v4365_v14  ;;  %v1953_v40 = vld [vmem:[%s4247_s5 + $0x58] sm:$0xff]  ;;  %v874_v49 = vadd.f32 %v842_v29, %v3605_v37  ;;  %v1037_v1 = vmul.f32 %v3460_v23, %v4368_v38  ;;  %v4378_v38 = vld [vmem:[#allocation43_spill] sm:$0xff] }
 0x1b6   : > { %v1085_v9 = vadd.f32 %v1053_v2, %v889_v22  ;;  %v4370_v37 = vld [vmem:[#allocation65_spill] sm:$0xff]  ;;  %v1327_v58 = vmax.f32 %v1295_v5, 0.0  ;;  %v4371_v29 = vld [vmem:[#allocation20_spill] sm:$0xff]  ;;  %v840_v2 = vmul.f32 %v3450_v34, %v4374_v56 }
 0x1b7   : > { %v1263_v31 = vpop.permute.xlu1 %1262  ;;  %2086 = vperm.xlu0 %2503, %v1964_v12   ;;  %v890_v12 = vadd.f32 %v858_v0, %v694_v10  ;;  %v479_v10 = vmul.f32 %v3440_v60, %v4370_v37  ;;  %v691_v55 = vadd.f32 %v659_v41, %v495_v30  ;;  %v839_v57 = vmul.f32 %v3450_v34, %v4371_v29  ;;  %v4372_v0 = vld [vmem:[#allocation21_spill] sm:$0xff]  ;;  %v1427_v30 = vld [vmem:[%s4246_s4 + $0xf0] sm:$0xff] }
 0x1b8   : > { %v1312_v61 = vadd.f32 %v1263_v31, %v1088_v13  ;;  %2021 = vperm.xlu1 %2506, %v1951_v45   ;;  %v4369_v45 = vld [vmem:[#allocation57_spill] sm:$0xff]  ;;  %v873_v13 = vadd.f32 %v841_v20, %v677_v62  ;;  %v1309_v18 = vadd.f32 %v3611_v19, %v1085_v9  ;;  %v643_v31 = vmul.f32 %v3442_v59, %v4372_v0 }
 0x1b9   : > { %v856_v6 = vmul.f32 %v3450_v34, %v4369_v45  ;;  %v1086_v46 = vadd.f32 %v1054_v8, %v890_v12  ;;  %v855_v20 = vmul.f32 %v3450_v34, %v4373_v33  ;;  %v3763_v8 = vpop.permute.xlu0 %1227  ;;  %v872_v9 = vadd.f32 %v840_v2, %v3603_v21  ;;  %v1428_v37 = vld [vmem:[%s4246_s4 + $0xf8] sm:$0xff]  ;;  %v4382_v21 = vld [vmem:[#allocation63_spill] sm:$0xff]  ;;  %v4385_v2 = vld [vmem:[#allocation30_spill] sm:$0xff] }
 0x1ba   : > { %v1344_v63 = vmax.f32 %v1312_v61, 0.0  ;;  %v4375_v61 = vld [vmem:[#allocation82_spill] sm:$0xff]  ;;  %v1341_v51 = vmax.f32 %v1309_v18, 0.0 }
 0x1bb   : > { %v1183_v52 = vpop.permute.xlu1 %1182  ;;  %2096 = vperm.xlu0 %2503, %v1966_v4   ;;  %v1051_v19 = vmul.f32 %v3460_v23, %v4375_v61  ;;  %v1069_v4 = vadd.f32 %v1037_v1, %v873_v13  ;;  %v888_v22 = vadd.f32 %v856_v6, %v3681_v32  ;;  %v887_v42 = vadd.f32 %v855_v20, %v691_v55  ;;  %v1959_v18 = vld [vmem:[%s4247_s5 + $0x88] sm:$0xff] }
 0x1bc   : > { %v1394_v3 = vpack.c.bf16 %v1344_v63, %v1343_v54  ;;  %v1296_v26 = vadd.f32 %v1183_v52, %v1072_v39  ;;  %2031 = vperm.xlu1 %2506, %v1953_v40   ;;  %v675_v39 = vadd.f32 %v643_v31, %v479_v10  ;;  %v4376_v40 = vld [vmem:[#allocation75_spill] sm:$0xff]  ;;  %v1070_v54 = vadd.f32 %v1038_v17, %v874_v49  ;;  %v1957_v63 = vld [vmem:[%s4247_s5 + $0x78] sm:$0xff] }
 0x1bd   : > { %v493_v5 = vmul.f32 %v3440_v60, %v4376_v40  ;;  %v1293_v41 = vadd.f32 %v3657_v25, %v1069_v4  ;;  %v4377_v52 = vld [vmem:[#allocation31_spill] sm:$0xff]  ;;  %v1036_v1 = vmul.f32 %v3460_v23, %v4378_v38  ;;  %v4381_v10 = vld [vmem:[#allocation56_spill] sm:$0xff]  ;;  %v477_v13 = vmul.f32 %v3440_v60, %v4382_v21  ;;  %v4383_v31 = vld [vmem:[#allocation17_spill] sm:$0xff] }
 0x1be   : > { %v1328_v7 = vmax.f32 %v1296_v26, 0.0  ;;  %2327 = vmatprep.subr.bf16.mxu0 %v1394_v3  ;;  %2437 = vmatprep.subr.bf16.mxu1 %v1394_v3  ;;  %v657_v32 = vmul.f32 %v3442_v59, %v4377_v52  ;;  %v4379_v17 = vld [vmem:[#allocation55_spill] sm:$0xff]  ;;  %v4380_v26 = vld [vmem:[#allocation70_spill] sm:$0xff]  ;;  %v854_v55 = vmul.f32 %v3450_v34, %v4381_v10  ;;  %v639_v33 = vmul.f32 %v3442_v59, %v4383_v31  ;;  %v2203_v10 = vld [vmem:[#allocation2] sm:$0x1] }
 0x1bf   : > { %v1253_v16 = vpop.permute.xlu1 %1252  ;;  %2106 = vperm.xlu0 %2503, %v1968_v43   ;;  %v1052_v49 = vmul.f32 %v3460_v23, %v4379_v17  ;;  %v1035_v25 = vmul.f32 %v3460_v23, %v4380_v26  ;;  %v1083_v43 = vadd.f32 %v1051_v19, %v887_v42  ;;  %v4384_v20 = vld [vmem:[#allocation19_spill] sm:$0xff]  ;;  %v1148_v19 = vpop.permute.xlu0 %1147  ;;  %v4389_v38 = vld [vmem:[#allocation18_spill] sm:$0xff] }
 0x1c0   : > { %v1386_v62 = vpack.c.bf16 %v1328_v7, %v1327_v58  ;;  %v1310_v14 = vadd.f32 %v1253_v16, %v1086_v46  ;;  %2041 = vperm.xlu1 %2506, %v1955_v35   ;;  %v871_v35 = vadd.f32 %v839_v57, %v675_v39  ;;  %v689_v7 = vadd.f32 %v657_v32, %v493_v5  ;;  %v4386_v16 = vld [vmem:[#allocation44_spill] sm:$0xff]  ;;  %v4394_v21 = vld [vmem:[#allocation54_spill] sm:$0xff] }
 0x1c1   : > { %v1084_v58 = vadd.f32 %v1052_v49, %v888_v22  ;;  %v1325_v46 = vmax.f32 %v1293_v41, 0.0  ;;  %v1307_v29 = vadd.f32 %v3699_v44, %v1083_v43  ;;  %v641_v56 = vmul.f32 %v3442_v59, %v4384_v20  ;;  %v1972_v39 = vld [vmem:[%s4247_s5 + $0xf0] sm:$0xff]  ;;  %v1961_v41 = vld [vmem:[%s4247_s5 + $0x98] sm:$0xff] }
 0x1c2   : > { %v1342_v12 = vmax.f32 %v1310_v14, 0.0  ;;  %2328 = vmatpush3.bf16.msra.mxu0 %v1386_v62  ;;  %2445 = vmatpush3.bf16.msra.mxu1 %v1386_v62  ;;  %v853_v57 = vmul.f32 %v3450_v34, %v4385_v2  ;;  %v838_v61 = vmul.f32 %v3450_v34, %v4386_v16  ;;  %v4387_v62 = vld [vmem:[#allocation81_spill] sm:$0xff]  ;;  %v1067_v14 = vadd.f32 %v1035_v25, %v871_v35  ;;  %v4393_v43 = vld [vmem:[#allocation68_spill] sm:$0xff] }
 0x1c3   : > { %v1173_v3 = vpop.permute.xlu1 %1172  ;;  %1581 = vperm.xlu0 %2503, %v1427_v30   ;;  %v1049_v44 = vmul.f32 %v3460_v23, %v4387_v62  ;;  %v886_v40 = vadd.f32 %v854_v55, %v3679_v28  ;;  %v673_v5 = vadd.f32 %v641_v56, %v477_v13  ;;  %v1339_v42 = vmax.f32 %v1307_v29, 0.0  ;;  %v4390_v28 = vld [vmem:[#allocation29_spill] sm:$0xff]  ;;  %v4395_v56 = vld [vmem:[#allocation28_spill] sm:$0xff] }
 0x1c4   : > { %v1393_v45 = vpack.c.bf16 %v1342_v12, %v1341_v51  ;;  %v1294_v6 = vadd.f32 %v1173_v3, %v1070_v54  ;;  %2051 = vperm.xlu1 %2506, %v1957_v63   ;;  %v4388_v54 = vld [vmem:[#allocation74_spill] sm:$0xff]  ;;  %v1068_v51 = vadd.f32 %v1036_v1, %v872_v9  ;;  %v1291_v12 = vadd.f32 %v3732_v50, %v1067_v14  ;;  %v4391_v3 = vld [vmem:[#allocation41_spill] sm:$0xff] }
 0x1c5   : > { %v491_v63 = vmul.f32 %v3440_v60, %v4388_v54  ;;  %v885_v52 = vadd.f32 %v853_v57, %v689_v7  ;;  %v837_v17 = vmul.f32 %v3450_v34, %v4389_v38  ;;  %v655_v49 = vmul.f32 %v3442_v59, %v4390_v28  ;;  %v4392_v9 = vld [vmem:[#allocation53_spill] sm:$0xff]  ;;  %v1963_v7 = vld [vmem:[%s4247_s5 + $0xa8] sm:$0xff]  ;;  %v4396_v57 = vld [vmem:[#allocation40_spill] sm:$0xff] }
 0x1c6   : > { %v1326_v0 = vmax.f32 %v1294_v6, 0.0  ;;  %2329 = vmatprep.subr.bf16.mxu0 %v1393_v45  ;;  %2438 = vmatprep.subr.bf16.mxu1 %v1393_v45  ;;  %v1034_v1 = vmul.f32 %v3460_v23, %v4391_v3  ;;  %v1050_v26 = vmul.f32 %v3460_v23, %v4392_v9  ;;  %v1033_v50 = vmul.f32 %v3460_v23, %v4393_v43  ;;  %v4403_v38 = vld [vmem:[#allocation61_spill] sm:$0xff]  ;;  %v4404_v3 = vld [vmem:[#allocation66_spill] sm:$0xff] }
 0x1c7   : > { %v1243_v4 = vpop.permute.xlu1 %1242  ;;  %1586 = vperm.xlu0 %2503, %v1428_v37   ;;  %v1081_v45 = vadd.f32 %v1049_v44, %v885_v52  ;;  %v870_v55 = vadd.f32 %v838_v61, %v3596_v48  ;;  %v852_v13 = vmul.f32 %v3450_v34, %v4394_v21  ;;  %v869_v35 = vadd.f32 %v837_v17, %v673_v5  ;;  %v4402_v52 = vld [vmem:[#allocation51_spill] sm:$0xff] }
 0x1c8   : > { %v1385_v30 = vpack.c.bf16 %v1326_v0, %v1325_v46  ;;  %v1308_v22 = vadd.f32 %v1243_v4, %v1084_v58  ;;  %2061 = vperm.xlu1 %2506, %v1959_v18   ;;  %v1218_v58 = vpop.permute.xlu0 %1217  ;;  %v1082_v18 = vadd.f32 %v1050_v26, %v886_v40  ;;  %v687_v46 = vadd.f32 %v655_v49, %v491_v63  ;;  %v4397_v4 = vld [vmem:[#allocation78_spill] sm:$0xff] }
 0x1c9   : > { %v1323_v29 = vmax.f32 %v1291_v12, 0.0  ;;  %v1305_v0 = vadd.f32 %v3763_v8, %v1081_v45  ;;  %v688_v48 = vadd.f32 %v3677_v53, %v3636_v27  ;;  %v671_v20 = vadd.f32 %v639_v33, %v3526_v11  ;;  %v4399_v11 = vld [vmem:[#allocation73_spill] sm:$0xff] }
 0x1ca   : > { %v1340_v32 = vmax.f32 %v1308_v22, 0.0  ;;  %2330 = vmatpush3.bf16.msra.mxu0 %v1385_v30  ;;  %2446 = vmatpush3.bf16.msra.mxu1 %v1385_v30  ;;  %v851_v2 = vmul.f32 %v3450_v34, %v4395_v56  ;;  %v835_v16 = vmul.f32 %v3450_v34, %v4396_v57  ;;  %v1047_v62 = vmul.f32 %v3460_v23, %v4397_v4  ;;  %v4398_v30 = vld [vmem:[#allocation42_spill] sm:$0xff] }
 0x1cb   : > { %v1163_v25 = vpop.permute.xlu1 %1162  ;;  %2126 = vperm.xlu0 %2503, %v1972_v39   ;;  %v1065_v8 = vadd.f32 %v1033_v50, %v869_v35  ;;  %v836_v27 = vmul.f32 %v3450_v34, %v4398_v30  ;;  %v884_v53 = vadd.f32 %v852_v13, %v688_v48  ;;  %v489_v33 = vmul.f32 %v3440_v60, %v4399_v11  ;;  %v1965_v39 = vld [vmem:[%s4247_s5 + $0xb8] sm:$0xff] }
 0x1cc   : > { %v1392_v6 = vpack.c.bf16 %v1340_v32, %v1339_v42  ;;  %v1292_v37 = vadd.f32 %v1163_v25, %v1068_v51  ;;  %2071 = vperm.xlu1 %2506, %v1961_v41   ;;  %v1066_v22 = vadd.f32 %v1034_v1, %v870_v55  ;;  %v1337_v40 = vmax.f32 %v1305_v0, 0.0  ;;  %v4400_v51 = vld [vmem:[#allocation27_spill] sm:$0xff]  ;;  %v1138_v28 = vpop.permute.xlu0 %1137  ;;  %v4405_v50 = vld [vmem:[#allocation52_spill] sm:$0xff] }
 0x1cd   : > { %v1289_v5 = vadd.f32 %v1148_v19, %v1065_v8  ;;  %v883_v54 = vadd.f32 %v851_v2, %v687_v46  ;;  %v653_v41 = vmul.f32 %v3442_v59, %v4400_v51  ;;  %v4401_v42 = vld [vmem:[#allocation39_spill] sm:$0xff]  ;;  %v1048_v32 = vmul.f32 %v3460_v23, %v4402_v52  ;;  %v4407_v46 = vld [vmem:[#allocation62_spill] sm:$0xff] }
 0x1ce   : > { %v1324_v31 = vmax.f32 %v1292_v37, 0.0  ;;  %2331 = vmatprep.subr.bf16.mxu0 %v1392_v6  ;;  %2439 = vmatprep.subr.bf16.mxu1 %v1392_v6  ;;  %v1032_v12 = vmul.f32 %v3460_v23, %v4401_v42  ;;  %v473_v17 = vmul.f32 %v3440_v60, %v4403_v38  ;;  %v1031_v19 = vmul.f32 %v3460_v23, %v4404_v3  ;;  %v1967_v37 = vld [vmem:[%s4247_s5 + $0xc8] sm:$0xff]  ;;  %v1970_v51 = vld [vmem:[%s4247_s5 + $0xe0] sm:$0xff] }
 0x1cf   : > { %v1233_v61 = vpop.permute.xlu1 %1232  ;;  %2206 = vperm.xlu0 %2503, %v2203_v10   ;;  %v1079_v1 = vadd.f32 %v1047_v62, %v883_v54  ;;  %v867_v25 = vadd.f32 %v835_v16, %v671_v20  ;;  %v868_v43 = vadd.f32 %v836_v27, %v3594_v15  ;;  %v850_v45 = vmul.f32 %v3450_v34, %v4405_v50  ;;  %v4409_v2 = vld [vmem:[#allocation15_spill] sm:$0xff] }
 0x1d0   : > { %v1384_v44 = vpack.c.bf16 %v1324_v31, %v1323_v29  ;;  %v1306_v14 = vadd.f32 %v1233_v61, %v1082_v18  ;;  %2081 = vperm.xlu1 %2506, %v1963_v7   ;;  %v1080_v6 = vadd.f32 %v1048_v32, %v884_v53  ;;  %v685_v10 = vadd.f32 %v653_v41, %v489_v33  ;;  %v4406_v18 = vld [vmem:[#allocation26_spill] sm:$0xff]  ;;  %v4408_v31 = vld [vmem:[#allocation76_spill] sm:$0xff]  ;;  %v1208_v61 = vpop.permute.xlu0 %1207 }
 0x1d1   : > { %v1321_v55 = vmax.f32 %v1289_v5, 0.0  ;;  %v1303_v21 = vadd.f32 %v1218_v58, %v1079_v1  ;;  %v686_v35 = vadd.f32 %v3624_v36, %v3618_v24  ;;  %v849_v15 = vmul.f32 %v3450_v34, %v4406_v18  ;;  %v4410_v24 = vld [vmem:[#allocation38_spill] sm:$0xff]  ;;  %v4413_v5 = vld [vmem:[#allocation37_spill] sm:$0xff]  ;;  %v4414_v41 = vld [vmem:[#allocation64_spill] sm:$0xff] }
 0x1d2   : > { %v1338_v63 = vmax.f32 %v1306_v14, 0.0  ;;  %2332 = vmatpush3.bf16.msra.mxu0 %v1384_v44  ;;  %2447 = vmatpush3.bf16.msra.mxu1 %v1384_v44  ;;  %v669_v7 = vadd.f32 %v3592_v47, %v473_v17  ;;  %v474_v29 = vmul.f32 %v3440_v60, %v4407_v46  ;;  %v1045_v48 = vmul.f32 %v3460_v23, %v4408_v31  ;;  %v1969_v60 = vld [vmem:[%s4247_s5 + $0xd8] sm:$0xff]  ;;  %v4411_v14 = vld [vmem:[#allocation50_spill] sm:$0xff] }
 0x1d3   : > { %v1153_v49 = vpop.permute.xlu1 %1152  ;;  %v1063_v20 = vadd.f32 %v1031_v19, %v867_v25  ;;  %v638_v57 = vmul.f32 %v3442_v59, %v4409_v2  ;;  %v833_v36 = vmul.f32 %v3450_v34, %v4410_v24  ;;  %v882_v16 = vadd.f32 %v850_v45, %v686_v35  ;;  %v1971_v19 = vld [vmem:[%s4247_s5 + $0xe8] sm:$0xff]  ;;  %v1973_v45 = vld [vmem:[%s4247_s5 + $0xf8] sm:$0xff] }
 0x1d4   : > { %v1391_v9 = vpack.c.bf16 %v1338_v63, %v1337_v40  ;;  %v1290_v26 = vadd.f32 %v1153_v49, %v1066_v22  ;;  %2091 = vperm.xlu1 %2506, %v1965_v39   ;;  %v1064_v47 = vadd.f32 %v1032_v12, %v868_v43  ;;  %v1335_v4 = vmax.f32 %v1303_v21, 0.0  ;;  %v4412_v39 = vld [vmem:[#allocation16_spill] sm:$0xff]  ;;  %v1128_v38 = vpop.permute.xlu0 %1127  ;;  %v2510_v21 = vld [vmem:[%s4245_s3 + $0x80] ss:$8 sps:$4 sm:$0xff]   ;;  %v2521_v46 = vld [vmem:[%s4245_s3 + $0xa4] ss:$8 sps:$4 sm:$0xff]  }
 0x1d5   : > { %v1287_v62 = vadd.f32 %v1138_v28, %v1063_v20  ;;  %v881_v8 = vadd.f32 %v849_v15, %v685_v10  ;;  %v1046_v30 = vmul.f32 %v3460_v23, %v4411_v14  ;;  %v865_v59 = vadd.f32 %v833_v36, %v669_v7  ;;  %v2515_v35 = vld [vmem:[%s4245_s3 + $0x94] ss:$8 sps:$4 sm:$0xff]   ;;  %v2517_v18 = vld [vmem:[%s4245_s3 + $0x10] ss:$8 sps:$4 sm:$0xff]   ;;  %v2519_v7 = vld [vmem:[%s4245_s3 + $0x24] ss:$8 sps:$4 sm:$0xff]  }
 0x1d6   : > { %v1322_v13 = vmax.f32 %v1290_v26, 0.0  ;;  %2333 = vmatprep.subr.bf16.mxu0 %v1391_v9  ;;  %2440 = vmatprep.subr.bf16.mxu1 %v1391_v9  ;;  %v670_v53 = vadd.f32 %v638_v57, %v474_v29  ;;  %v834_v40 = vmul.f32 %v3450_v34, %v4412_v39  ;;  %v1029_v54 = vmul.f32 %v3460_v23, %v4413_v5  ;;  %v2518_v15 = vld [vmem:[%s4245_s3 + $0x90] ss:$8 sps:$4 sm:$0xff]   ;;  %v2523_v29 = vld [vmem:[%s4245_s3 + $0x20] ss:$8 sps:$4 sm:$0xff]  }
 0x1d7   : > { %v1223_v0 = vpop.permute.xlu1 %1222  ;;  %v1077_v11 = vadd.f32 %v1045_v48, %v881_v8  ;;  %v1078_v63 = vadd.f32 %v1046_v30, %v882_v16  ;;  %v1030_v42 = vmul.f32 %v3460_v23, %v4414_v41  ;;  %v1319_v12 = vmax.f32 %v1287_v62, 0.0  ;;  %v2525_v31 = vld [vmem:[%s4245_s3 + $0x34] ss:$8 sps:$4 sm:$0xff]   ;;  %v2529_v20 = vld [vmem:[%s4245_s3 + $0x30] ss:$8 sps:$4 sm:$0xff]  }
 0x1d8   : > { %v1383_v58 = vpack.c.bf16 %v1322_v13, %v1321_v55  ;;  %v1304_v56 = vadd.f32 %v1223_v0, %v1080_v6  ;;  %2101 = vperm.xlu1 %2506, %v1967_v37   ;;  %v1061_v28 = vadd.f32 %v1029_v54, %v865_v59  ;;  %v866_v3 = vadd.f32 %v834_v40, %v670_v53  ;;  %v2507_v55 = vld [vmem:[%s4245_s3] ss:$8 sps:$4 sm:$0xff]   ;;  %v2513_v13 = vld [vmem:[%s4245_s3 + $0x14] ss:$8 sps:$4 sm:$0xff]   ;;  %v2533_v2 = vld [vmem:[%s4245_s3 + $0xc4] ss:$8 sps:$4 sm:$0xff]  }
 0x1d9   : > { %v1301_v52 = vadd.f32 %v1208_v61, %v1077_v11  ;;  %v2524_v0 = vld [vmem:[%s4245_s3 + $0xa0] ss:$8 sps:$4 sm:$0xff]   ;;  %v2527_v48 = vld [vmem:[%s4245_s3 + $0xb4] ss:$8 sps:$4 sm:$0xff]   ;;  %v2541_v61 = vld [vmem:[%s4245_s3 + $0x50] ss:$8 sps:$4 sm:$0xff]  }
 0x1da   : > { %v1336_v44 = vmax.f32 %v1304_v56, 0.0  ;;  %2334 = vmatpush3.bf16.msra.mxu0 %v1383_v58  ;;  %2448 = vmatpush3.bf16.msra.mxu1 %v1383_v58  ;;  %v1285_v9 = vadd.f32 %v1128_v38, %v1061_v28  ;;  %v1062_v23 = vadd.f32 %v1030_v42, %v866_v3  ;;  %v2530_v58 = vld [vmem:[%s4245_s3 + $0xb0] ss:$8 sps:$4 sm:$0xff]   ;;  %v2531_v56 = vld [vmem:[%s4245_s3 + $0x44] ss:$8 sps:$4 sm:$0xff]  }
 0x1db   : > { %v1143_v27 = vpop.permute.xlu1 %1142  ;;  %v1333_v1 = vmax.f32 %v1301_v52, 0.0  ;;  %v2535_v57 = vld [vmem:[%s4245_s3 + $0x40] ss:$8 sps:$4 sm:$0xff]   ;;  %v2537_v36 = vld [vmem:[%s4245_s3 + $0x54] ss:$8 sps:$4 sm:$0xff]  }
 0x1dc   : > { %v1390_v33 = vpack.c.bf16 %v1336_v44, %v1335_v4  ;;  %v1288_v22 = vadd.f32 %v1143_v27, %v1064_v47  ;;  %2111 = vperm.xlu1 %2506, %v1969_v60   ;;  %v1317_v6 = vmax.f32 %v1285_v9, 0.0  ;;  %v2536_v24 = vld [vmem:[%s4245_s3 + $0xc0] ss:$8 sps:$4 sm:$0xff]   ;;  %v2539_v16 = vld [vmem:[%s4245_s3 + $0xd4] ss:$8 sps:$4 sm:$0xff]   ;;  %v3981_v27 = vpop.permute.xlu0 %1431 }
 0x1dd   : > { %v2542_v47 = vld [vmem:[%s4245_s3 + $0xd0] ss:$8 sps:$4 sm:$0xff]   ;;  %v2543_v60 = vld [vmem:[%s4245_s3 + $0x64] ss:$8 sps:$4 sm:$0xff]   ;;  %v2547_v62 = vld [vmem:[%s4245_s3 + $0x60] ss:$8 sps:$4 sm:$0xff]  }
 0x1de   : > { %v1320_v32 = vmax.f32 %v1288_v22, 0.0  ;;  %2335 = vmatprep.subr.bf16.mxu0 %v1390_v33  ;;  %2441 = vmatprep.subr.bf16.mxu1 %v1390_v33  ;;  %v2545_v4 = vld [vmem:[%s4245_s3 + $0xe4] ss:$8 sps:$4 sm:$0xff]   ;;  %v2548_v8 = vld [vmem:[%s4245_s3 + $0xe0] ss:$8 sps:$4 sm:$0xff]  }
 0x1df   : > { %v1213_v17 = vpop.permute.xlu1 %1212  ;;  %v2549_v44 = vld [vmem:[%s4245_s3 + $0x74] ss:$8 sps:$4 sm:$0xff]   ;;  %v2553_v30 = vld [vmem:[%s4245_s3 + $0x70] ss:$8 sps:$4 sm:$0xff]  }
 0x1e0   : > { %v1382_v34 = vpack.c.bf16 %v1320_v32, %v1319_v12  ;;  %v1302_v49 = vadd.f32 %v1213_v17, %v1078_v63  ;;  %2116 = vperm.xlu1 %2506, %v1970_v51   ;;  %v2551_v14 = vld [vmem:[%s4245_s3 + $0xf4] ss:$8 sps:$4 sm:$0xff]   ;;  %v2554_v59 = vld [vmem:[%s4245_s3 + $0xf0] ss:$8 sps:$4 sm:$0xff]   ;;  %v3985_v11 = vpop.permute.xlu0 %1441 }
 0x1e2   : > { %v1334_v26 = vmax.f32 %v1302_v49, 0.0  ;;  %2336 = vmatpush3.bf16.msra.mxu0 %v1382_v34  ;;  %2449 = vmatpush3.bf16.msra.mxu1 %v1382_v34 }
 0x1e3   : > { %v1133_v25 = vpop.permute.xlu1 %1132 }
 0x1e4   : > { %v1389_v43 = vpack.c.bf16 %v1334_v26, %v1333_v1  ;;  %v1286_v50 = vadd.f32 %v1133_v25, %v1062_v23  ;;  %2121 = vperm.xlu1 %2506, %v1971_v19   ;;  %v3989_v22 = vpop.permute.xlu0 %1451 }
 0x1e6   : > { %v1318_v37 = vmax.f32 %v1286_v50, 0.0  ;;  %2337 = vmatprep.subr.bf16.mxu0 %v1389_v43  ;;  %2442 = vmatprep.subr.bf16.mxu1 %v1389_v43 }
 0x1e7   : > { %v3983_v53 = vpop.permute.xlu1 %1436 }
 0x1e8   : > { %v1381_v10 = vpack.c.bf16 %v1318_v37, %v1317_v6  ;;  %2131 = vperm.xlu1 %2506, %v1973_v45   ;;  %v3993_v40 = vpop.permute.xlu0 %1461 }
 0x1ea   : > { %2338 = vmatpush3.bf16.msra.mxu0 %v1381_v10  ;;  %2450 = vmatpush3.bf16.msra.mxu1 %v1381_v10 }
 0x1eb   : > { %v3987_v33 = vpop.permute.xlu1 %1446 }
 0x1ec   : > { %v3997_v54 = vpop.permute.xlu0 %1471 }
 0x1ed   : > { %1782 = vmatmul.mubr.bf16.vlgmr.msra.gmra.mxu0 %v2507_v55  ;;  %1846 = vmatmul.mubr.bf16.vlgmr.msra.gmra.mxu1 %v2510_v21 }
 0x1ee   : > { %1789 = vmatprep.mubr.bf16.mxu0 %v2513_v13  ;;  %1853 = vmatprep.mubr.bf16.mxu1 %v2515_v35 }
 0x1ef   : > { %v3991_v39 = vpop.permute.xlu1 %1456 }
 0x1f0   : > { %v4001_v51 = vpop.permute.xlu0 %1481 }
 0x1f3   : > { %v3995_v5 = vpop.permute.xlu1 %1466 }
 0x1f4   : > { %v4005_v42 = vpop.permute.xlu0 %1491 }
 0x1f5   : > { %1790 = vmatmul.mubr.bf16.gmra.mxu0 %v2517_v18  ;;  %1854 = vmatmul.mubr.bf16.gmra.mxu1 %v2518_v15 }
 0x1f6   : > { %1797 = vmatprep.mubr.bf16.mxu0 %v2519_v7  ;;  %1861 = vmatprep.mubr.bf16.mxu1 %v2521_v46 }
 0x1f7   : > { %v3999_v63 = vpop.permute.xlu1 %1476 }
 0x1f8   : > { %v4009_v52 = vpop.permute.xlu0 %1501 }
 0x1fb   : > { %v4003_v41 = vpop.permute.xlu1 %1486 }
 0x1fc   : > { %v4013_v38 = vpop.permute.xlu0 %1511 }
 0x1fd   : > { %1798 = vmatmul.mubr.bf16.gmra.mxu0 %v2523_v29  ;;  %1862 = vmatmul.mubr.bf16.gmra.mxu1 %v2524_v0 }
 0x1fe   : > { %1805 = vmatprep.mubr.bf16.mxu0 %v2525_v31  ;;  %1869 = vmatprep.mubr.bf16.mxu1 %v2527_v48 }
 0x1ff   : > { %v4007_v12 = vpop.permute.xlu1 %1496 }
 0x200   : > { %v4017_v28 = vpop.permute.xlu0 %1521 }
 0x203   : > { %v4011_v32 = vpop.permute.xlu1 %1506 }
 0x204   : > { %v4021_v49 = vpop.permute.xlu0 %1531 }
 0x205   : > { %1806 = vmatmul.mubr.bf16.gmra.mxu0 %v2529_v20  ;;  %1870 = vmatmul.mubr.bf16.gmra.mxu1 %v2530_v58  ;;  %4416 = vst [vmem:[#allocation6_spill] sm:$0xff] %v4021_v49 }
 0x206   : > { %1813 = vmatprep.mubr.bf16.mxu0 %v2531_v56  ;;  %1877 = vmatprep.mubr.bf16.mxu1 %v2533_v2 }
 0x207   : > { %v4015_v17 = vpop.permute.xlu1 %1516 }
 0x208   : > { %v4025_v19 = vpop.permute.xlu0 %1541 }
 0x209   : > { %4418 = vst [vmem:[#allocation36_spill] sm:$0xff] %v4025_v19 }
 0x20b   : > { %v4019_v34 = vpop.permute.xlu1 %1526 }
 0x20c   : > { %4415 = vst [vmem:[#allocation14_spill] sm:$0xff] %v4019_v34  ;;  %v4029_v9 = vpop.permute.xlu0 %1551 }
 0x20d   : > { %1814 = vmatmul.mubr.bf16.gmra.mxu0 %v2535_v57  ;;  %1878 = vmatmul.mubr.bf16.gmra.mxu1 %v2536_v24  ;;  %4420 = vst [vmem:[#allocation69_spill] sm:$0xff] %v4029_v9 }
 0x20e   : > { %1821 = vmatprep.mubr.bf16.mxu0 %v2537_v36  ;;  %1885 = vmatprep.mubr.bf16.mxu1 %v2539_v16 }
 0x20f   : > { %v4023_v3 = vpop.permute.xlu1 %1536 }
 0x210   : > { %4417 = vst [vmem:[#allocation8_spill] sm:$0xff] %v4023_v3  ;;  %v4033_v23 = vpop.permute.xlu0 %1561 }
 0x211   : > { %4422 = vst [vmem:[#allocation10_spill] sm:$0xff] %v4033_v23 }
 0x213   : > { %v4027_v1 = vpop.permute.xlu1 %1546 }
 0x214   : > { %4419 = vst [vmem:[#allocation60_spill] sm:$0xff] %v4027_v1  ;;  %v4037_v43 = vpop.permute.xlu0 %1571 }
 0x215   : > { %1822 = vmatmul.mubr.bf16.gmra.mxu0 %v2541_v61  ;;  %1886 = vmatmul.mubr.bf16.gmra.mxu1 %v2542_v47  ;;  %4424 = vst [vmem:[#allocation25_spill] sm:$0xff] %v4037_v43 }
 0x216   : > { %1829 = vmatprep.mubr.bf16.mxu0 %v2543_v60  ;;  %1893 = vmatprep.mubr.bf16.mxu1 %v2545_v4 }
 0x217   : > { %v4031_v26 = vpop.permute.xlu1 %1556 }
 0x218   : > { %4421 = vst [vmem:[#allocation9_spill] sm:$0xff] %v4031_v26  ;;  %v4043_v37 = vpop.permute.xlu0 %1976 }
 0x21b   : > { %v4035_v25 = vpop.permute.xlu1 %1566 }
 0x21c   : > { %4423 = vst [vmem:[#allocation11_spill] sm:$0xff] %v4035_v25  ;;  %v4051_v7 = vpop.permute.xlu0 %1986 }
 0x21d   : > { %1830 = vmatmul.mubr.bf16.gmra.mxu0 %v2547_v62  ;;  %1894 = vmatmul.mubr.bf16.gmra.mxu1 %v2548_v8 }
 0x21e   : > { %1837 = vmatprep.mubr.bf16.mxu0 %v2549_v44  ;;  %1901 = vmatprep.mubr.bf16.mxu1 %v2551_v14 }
 0x21f   : > { %v4039_v50 = vpop.permute.xlu1 %1576 }
 0x220   : > { %4425 = vst [vmem:[#allocation12_spill] sm:$0xff] %v4039_v50  ;;  %v4061_v56 = vpop.permute.xlu0 %1996 }
 0x223   : > { %v1982_v21 = vpop.permute.xlu1 %1981 }
 0x224   : > { %v4071_v60 = vpop.permute.xlu0 %2006 }
 0x225   : > { %1838 = vmatmul.mubr.bf16.gmra.mxu0 %v2553_v30  ;;  %1902 = vmatmul.mubr.bf16.gmra.mxu1 %v2554_v59 }
 0x227   : > { %v4055_v0 = vpop.permute.xlu1 %1991 }
 0x228   : > { %v4081_v50 = vpop.permute.xlu0 %2016 }
 0x22b   : > { %v4065_v24 = vpop.permute.xlu1 %2001 }
 0x22f   : > { %v4075_v8 = vpop.permute.xlu1 %2011 }
 0x233   : > { %v4085_v26 = vpop.permute.xlu1 %2021 }
 0x2ad   : > { %v2339_v45 = vpop.f32.mrf.mxu0  ;;  %v4041_v6 = vpop.f32.mrf.mxu1 }
 0x2af   : > { %v2340_v10 = vpop.f32.mrf.mxu0  ;;  %v4045_v55 = vpop.f32.mrf.mxu1 }
 0x2b0   : > { %v2341_v9 = vadd.f32 %v2340_v10, %v2339_v45  ;;  %v4098_v45 = vpop.permute.xlu1 %2031 }
 0x2b1   : > { %v2342_v13 = vpop.f32.mrf.mxu0  ;;  %v4047_v35 = vpop.f32.mrf.mxu1 }
 0x2b3   : > { %v2343_v18 = vpop.f32.mrf.mxu0  ;;  %v4049_v15 = vpop.f32.mrf.mxu1 }
 0x2b4   : > { %v2344_v43 = vadd.f32 %v2343_v18, %v2342_v13  ;;  %v1784_v13 = vadd.f32 %v2341_v9, %v3981_v27 }
 0x2b5   : > { %v2345_v46 = vpop.f32.mrf.mxu0  ;;  %v4053_v29 = vpop.f32.mrf.mxu1 }
 0x2b6   : > { %v1787_v49 = vadd.f32 %v2344_v43, %v3983_v53 }
 0x2b7   : > { %v2346_v31 = vpop.f32.mrf.mxu0  ;;  %v4057_v48 = vpop.f32.mrf.mxu1 }
 0x2b8   : > { %v2347_v1 = vadd.f32 %v2346_v31, %v2345_v46  ;;  %v1911_v10 = vmax.f32 %v1787_v49, 0.0 }
 0x2b9   : > { %v2348_v20 = vpop.f32.mrf.mxu0  ;;  %v4059_v58 = vpop.f32.mrf.mxu1 }
 0x2ba   : > { %v1792_v18 = vadd.f32 %v2347_v1, %v3985_v11 }
 0x2bb   : > { %v2349_v2 = vpop.f32.mrf.mxu0  ;;  %v4063_v57 = vpop.f32.mrf.mxu1 }
 0x2bd   : > { %v2351_v36 = vpop.f32.mrf.mxu0  ;;  %v4067_v16 = vpop.f32.mrf.mxu1 }
 0x2be   : > { %4426 = vst [vmem:[#allocation13_spill] sm:$0xff] %v4067_v16 }
 0x2bf   : > { %v2352_v61 = vpop.f32.mrf.mxu0  ;;  %v4069_v47 = vpop.f32.mrf.mxu1 }
 0x2c0   : > { %4427 = vst [vmem:[#allocation49_spill] sm:$0xff] %v4069_v47 }
 0x2c1   : > { %v2354_v4 = vpop.f32.mrf.mxu0  ;;  %v4073_v62 = vpop.f32.mrf.mxu1 }
 0x2c2   : > { %4428 = vst [vmem:[#allocation79_spill] sm:$0xff] %v4073_v62  ;;  %v2350_v62 = vadd.f32 %v2349_v2, %v2348_v20  ;;  %v1910_v20 = vmax.f32 %v1784_v13, 0.0  ;;  %v1912_v2 = vmax.f32 %v1792_v18, 0.0 }
 0x2c3   : > { %v2355_v44 = vpop.f32.mrf.mxu0  ;;  %v4077_v14 = vpop.f32.mrf.mxu1 }
 0x2c4   : > { %4429 = vst [vmem:[#allocation7_spill] sm:$0xff] %v4077_v14  ;;  %v1795_v46 = vadd.f32 %v2350_v62, %v3987_v33  ;;  %v2356_v53 = vadd.f32 %v2355_v44, %v2354_v4  ;;  %v4111_v4 = vpop.permute.xlu1 %2041  ;;  %v2134_v44 = vmul.f32 %v4043_v37, %v1910_v20 }
 0x2c5   : > { %v2357_v30 = vpop.f32.mrf.mxu0  ;;  %v4079_v59 = vpop.f32.mrf.mxu1 }
 0x2c6   : > { %4430 = vst [vmem:[#allocation35_spill] sm:$0xff] %v4079_v59  ;;  %v4092_v59 = vpop.permute.xlu0 %2026  ;;  %v1803_v49 = vadd.f32 %v2356_v53, %v3991_v39 }
 0x2c7   : > { %v2358_v25 = vpop.f32.mrf.mxu0  ;;  %v4083_v23 = vpop.f32.mrf.mxu1 }
 0x2c8   : > { %4431 = vst [vmem:[#allocation24_spill] sm:$0xff] %v4083_v23  ;;  %v2353_v23 = vadd.f32 %v2352_v61, %v2351_v36  ;;  %v2359_v1 = vadd.f32 %v2358_v25, %v2357_v30  ;;  %v2135_v36 = vmul.f32 %v1982_v21, %v1911_v10  ;;  %v1913_v61 = vmax.f32 %v1795_v46, 0.0  ;;  %v4123_v53 = vpop.permute.xlu1 %2051 }
 0x2c9   : > { %v2360_v19 = vpop.f32.mrf.mxu0  ;;  %v4087_v3 = vpop.f32.mrf.mxu1  ;;  %v1915_v30 = vmax.f32 %v1803_v49, 0.0 }
 0x2ca   : > { %v4106_v11 = vpop.permute.xlu0 %2036  ;;  %v1808_v18 = vadd.f32 %v2359_v1, %v3993_v40  ;;  %v2166_v25 = vadd.f32 %v2135_v36, %v2134_v44  ;;  %v2137_v21 = vmul.f32 %v4055_v0, %v1913_v61 }
 0x2cb   : > { %v2361_v14 = vpop.f32.mrf.mxu0  ;;  %v4090_v34 = vpop.f32.mrf.mxu1  ;;  %v2139_v20 = vmul.f32 %v4065_v24, %v1915_v30 }
 0x2cc   : > { %4432 = vst [vmem:[#allocation59_spill] sm:$0xff] %v4090_v34  ;;  %v1800_v34 = vadd.f32 %v2353_v23, %v3989_v22  ;;  %v2362_v62 = vadd.f32 %v2361_v14, %v2360_v19  ;;  %v2136_v22 = vmul.f32 %v4051_v7, %v1912_v2  ;;  %v1916_v40 = vmax.f32 %v1808_v18, 0.0 }
 0x2cd   : > { %v2363_v47 = vpop.f32.mrf.mxu0  ;;  %v4096_v16 = vpop.f32.mrf.mxu1 }
 0x2ce   : > { %4433 = vst [vmem:[#allocation72_spill] sm:$0xff] %v4096_v16  ;;  %v1914_v23 = vmax.f32 %v1800_v34, 0.0  ;;  %v4119_v46 = vpop.permute.xlu0 %2046  ;;  %v1811_v19 = vadd.f32 %v2362_v62, %v3995_v5  ;;  %v2167_v37 = vadd.f32 %v2166_v25, %v2136_v22  ;;  %v2140_v49 = vmul.f32 %v4071_v60, %v1916_v40  ;;  %v4136_v22 = vpop.permute.xlu1 %2061 }
 0x2cf   : > { %v2364_v43 = vpop.f32.mrf.mxu0  ;;  %v4101_v31 = vpop.f32.mrf.mxu1 }
 0x2d0   : > { %v2138_v7 = vmul.f32 %v4061_v56, %v1914_v23  ;;  %v2168_v0 = vadd.f32 %v2167_v37, %v2137_v21  ;;  %v1917_v36 = vmax.f32 %v1811_v19, 0.0 }
 0x2d1   : > { %v2366_v27 = vpop.f32.mrf.mxu0  ;;  %v4104_v9 = vpop.f32.mrf.mxu1 }
 0x2d2   : > { %4434 = vst [vmem:[#allocation47_spill] sm:$0xff] %v4104_v9  ;;  %v2365_v9 = vadd.f32 %v2364_v43, %v2363_v47  ;;  %v4130_v56 = vpop.permute.xlu0 %2056  ;;  %v2141_v23 = vmul.f32 %v4075_v8, %v1917_v36 }
 0x2d3   : > { %v2367_v16 = vpop.f32.mrf.mxu0  ;;  %v4109_v33 = vpop.f32.mrf.mxu1 }
 0x2d4   : > { %v2368_v14 = vadd.f32 %v2367_v16, %v2366_v27  ;;  %v1816_v47 = vadd.f32 %v2365_v9, %v3997_v54  ;;  %v2169_v27 = vadd.f32 %v2168_v0, %v2138_v7 }
 0x2d5   : > { %v2369_v13 = vpop.f32.mrf.mxu0  ;;  %v4117_v39 = vpop.f32.mrf.mxu1 }
 0x2d6   : > { %v1819_v5 = vadd.f32 %v2368_v14, %v3999_v63  ;;  %v1918_v62 = vmax.f32 %v1816_v47, 0.0  ;;  %v2170_v9 = vadd.f32 %v2169_v27, %v2139_v20  ;;  %v4144_v14 = vpop.permute.xlu0 %2066  ;;  %v2392_v27 = vadd.f32 %v4049_v15, %v4047_v35 }
 0x2d7   : > { %v2370_v10 = vpop.f32.mrf.mxu0  ;;  %v4127_v2 = vpop.f32.mrf.mxu1 }
 0x2d8   : > { %v2371_v43 = vadd.f32 %v2370_v10, %v2369_v13  ;;  %v1919_v13 = vmax.f32 %v1819_v5, 0.0  ;;  %v2171_v21 = vadd.f32 %v2170_v9, %v2140_v49  ;;  %v2142_v30 = vmul.f32 %v4081_v50, %v1918_v62 }
 0x2d9   : > { %v2372_v34 = vpop.f32.mrf.mxu0  ;;  %v4134_v44 = vpop.f32.mrf.mxu1 }
 0x2da   : > { %v1824_v54 = vadd.f32 %v2371_v43, %v4001_v51  ;;  %v2172_v37 = vadd.f32 %v2171_v21, %v2141_v23  ;;  %v2143_v7 = vmul.f32 %v4085_v26, %v1919_v13  ;;  %v2077_v49 = vpop.permute.xlu0 %2076  ;;  %v1851_v13 = vadd.f32 %v2392_v27, %v4015_v17  ;;  %v4436_v21 = vld [vmem:[#allocation49_spill] sm:$0xff]  ;;  %v4437_v17 = vld [vmem:[#allocation14_spill] sm:$0xff]  ;;  %v4444_v27 = vld [vmem:[#allocation59_spill] sm:$0xff] }
 0x2db   : > { %v2373_v1 = vpop.f32.mrf.mxu0  ;;  %v4142_v51 = vpop.f32.mrf.mxu1 }
 0x2dc   : > { %v2374_v16 = vadd.f32 %v2373_v1, %v2372_v34  ;;  %v1920_v60 = vmax.f32 %v1824_v54, 0.0  ;;  %v2173_v47 = vadd.f32 %v2172_v37, %v2142_v30 }
 0x2dd   : > { %v2375_v61 = vpop.f32.mrf.mxu0  ;;  %v4153_v20 = vpop.f32.mrf.mxu1 }
 0x2de   : > { %v1827_v63 = vadd.f32 %v2374_v16, %v4003_v41  ;;  %v4147_v41 = vpop.permute.xlu1 %2071  ;;  %v2144_v43 = vmul.f32 %v4092_v59, %v1920_v60  ;;  %v2174_v36 = vadd.f32 %v2173_v47, %v2143_v7  ;;  %v4438_v7 = vld [vmem:[#allocation79_spill] sm:$0xff]  ;;  %v4440_v47 = vld [vmem:[#allocation6_spill] sm:$0xff] }
 0x2df   : > { %v2376_v24 = vpop.f32.mrf.mxu0  ;;  %v4163_v54 = vpop.f32.mrf.mxu1 }
 0x2e0   : > { %v2377_v18 = vadd.f32 %v2376_v24, %v2375_v61  ;;  %v1921_v8 = vmax.f32 %v1827_v63, 0.0  ;;  %v2175_v59 = vadd.f32 %v2174_v36, %v2144_v43 }
 0x2e1   : > { %v2378_v25 = vpop.f32.mrf.mxu0 }
 0x2e2   : > { %v1832_v10 = vadd.f32 %v2377_v18, %v4005_v42  ;;  %v2389_v42 = vadd.f32 %v4045_v55, %v4041_v6  ;;  %v2145_v26 = vmul.f32 %v4098_v45, %v1921_v8  ;;  %v2395_v55 = vadd.f32 %v4057_v48, %v4053_v29  ;;  %v2082_v15 = vpop.permute.xlu1 %2081  ;;  %v2426_v48 = vpop.f32.mrf.mxu1 }
 0x2e3   : > { %v2379_v19 = vpop.f32.mrf.mxu0 }
 0x2e4   : > { %v2380_v34 = vadd.f32 %v2379_v19, %v2378_v25  ;;  %v1922_v50 = vmax.f32 %v1832_v10, 0.0  ;;  %v1848_v6 = vadd.f32 %v2389_v42, %v4013_v38  ;;  %v2176_v9 = vadd.f32 %v2175_v59, %v2145_v26  ;;  %v4435_v25 = vld [vmem:[#allocation13_spill] sm:$0xff]  ;;  %v2087_v10 = vpop.permute.xlu0 %2086 }
 0x2e5   : > { %v2381_v40 = vpop.f32.mrf.mxu0  ;;  %v1856_v18 = vadd.f32 %v2395_v55, %v4017_v28  ;;  %v1927_v19 = vmax.f32 %v1851_v13, 0.0 }
 0x2e6   : > { %v1835_v0 = vadd.f32 %v2380_v34, %v4007_v12  ;;  %v2146_v62 = vmul.f32 %v4106_v11, %v1922_v50  ;;  %v2398_v11 = vadd.f32 %v4063_v57, %v4059_v58  ;;  %v1926_v29 = vmax.f32 %v1848_v6, 0.0  ;;  %v4439_v58 = vld [vmem:[#allocation7_spill] sm:$0xff] }
 0x2e7   : > { %v2382_v1 = vpop.f32.mrf.mxu0  ;;  %v2404_v57 = vadd.f32 %v4439_v58, %v4438_v7  ;;  %v1928_v28 = vmax.f32 %v1856_v18, 0.0  ;;  %v4441_v50 = vld [vmem:[#allocation35_spill] sm:$0xff]  ;;  %v2151_v36 = vmul.f32 %v4136_v22, %v1927_v19 }
 0x2e8   : > { %v1923_v5 = vmax.f32 %v1835_v0, 0.0  ;;  %v2383_v16 = vadd.f32 %v2382_v1, %v2381_v40  ;;  %v1859_v37 = vadd.f32 %v2398_v11, %v4437_v17  ;;  %v2150_v34 = vmul.f32 %v4130_v56, %v1926_v29  ;;  %v2427_v40 = vpop.f32.mrf.mxu1  ;;  %v4442_v0 = vld [vmem:[#allocation24_spill] sm:$0xff]  ;;  %v2097_v59 = vpop.permute.xlu0 %2096  ;;  %v4447_v22 = vld [vmem:[#allocation47_spill] sm:$0xff] }
 0x2e9   : > { %v2384_v61 = vpop.f32.mrf.mxu0  ;;  %v2407_v42 = vadd.f32 %v4442_v0, %v4441_v50  ;;  %v2152_v6 = vmul.f32 %v4144_v14, %v1928_v28  ;;  %v2419_v14 = vadd.f32 %v4127_v2, %v4117_v39  ;;  %v4452_v28 = vld [vmem:[#allocation11_spill] sm:$0xff] }
 0x2ea   : > { %v1840_v12 = vadd.f32 %v2383_v16, %v4009_v52  ;;  %v2147_v24 = vmul.f32 %v4111_v4, %v1923_v5  ;;  %v2177_v52 = vadd.f32 %v2176_v9, %v2146_v62  ;;  %v2401_v4 = vadd.f32 %v4436_v21, %v4435_v25  ;;  %v4443_v5 = vld [vmem:[#allocation8_spill] sm:$0xff] }
 0x2eb   : > { %v2385_v45 = vpop.f32.mrf.mxu0  ;;  %v1929_v26 = vmax.f32 %v1859_v37, 0.0  ;;  %v1867_v16 = vadd.f32 %v2404_v57, %v4443_v5  ;;  %v4445_v62 = vld [vmem:[#allocation72_spill] sm:$0xff] }
 0x2ec   : > { %v1924_v23 = vmax.f32 %v1840_v12, 0.0  ;;  %v2386_v35 = vadd.f32 %v2385_v45, %v2384_v61  ;;  %v2178_v30 = vadd.f32 %v2177_v52, %v2147_v24  ;;  %v1864_v43 = vadd.f32 %v2401_v4, %v4440_v47  ;;  %v2429_v12 = vpop.f32.mrf.mxu1  ;;  %v4446_v45 = vld [vmem:[#allocation36_spill] sm:$0xff]  ;;  %v2107_v4 = vpop.permute.xlu0 %2106 }
 0x2ed   : > { %v2410_v61 = vadd.f32 %v4444_v27, %v4087_v3  ;;  %v2413_v56 = vadd.f32 %v4101_v31, %v4445_v62  ;;  %v1872_v9 = vadd.f32 %v2407_v42, %v4446_v45  ;;  %v2153_v13 = vmul.f32 %v4147_v41, %v1929_v26  ;;  %v4448_v3 = vld [vmem:[#allocation60_spill] sm:$0xff]  ;;  %v4453_v42 = vld [vmem:[#allocation25_spill] sm:$0xff] }
 0x2ee   : > { %v2148_v38 = vmul.f32 %v4119_v46, %v1924_v23  ;;  %v1843_v63 = vadd.f32 %v2386_v35, %v4011_v32  ;;  %v2092_v32 = vpop.permute.xlu1 %2091  ;;  %v1930_v55 = vmax.f32 %v1864_v43, 0.0  ;;  %v2416_v35 = vadd.f32 %v4109_v33, %v4447_v22  ;;  %v2430_v31 = vpop.f32.mrf.mxu1  ;;  %v4454_v27 = vld [vmem:[#allocation12_spill] sm:$0xff] }
 0x2ef   : > { %v1931_v11 = vmax.f32 %v1867_v16, 0.0  ;;  %v1875_v52 = vadd.f32 %v2410_v61, %v4448_v3  ;;  %v1932_v25 = vmax.f32 %v1872_v9, 0.0  ;;  %v2422_v41 = vadd.f32 %v4142_v51, %v4134_v44 }
 0x2f0   : > { %v1925_v60 = vmax.f32 %v1843_v63, 0.0  ;;  %v2179_v8 = vadd.f32 %v2178_v30, %v2148_v38  ;;  %v4449_v63 = vld [vmem:[#allocation69_spill] sm:$0xff]  ;;  %v2154_v18 = vmul.f32 %v2077_v49, %v1930_v55  ;;  %v2432_v58 = vpop.f32.mrf.mxu1  ;;  %v1582_v50 = vpop.permute.xlu0 %1581 }
 0x2f1   : > { %v1880_v29 = vadd.f32 %v2413_v56, %v4449_v63  ;;  %v4450_v30 = vld [vmem:[#allocation9_spill] sm:$0xff]  ;;  %v2155_v19 = vmul.f32 %v2082_v15, %v1931_v11  ;;  %v1933_v33 = vmax.f32 %v1875_v52, 0.0  ;;  %v2156_v57 = vmul.f32 %v2087_v10, %v1932_v25 }
 0x2f2   : > { %v2149_v46 = vmul.f32 %v4123_v53, %v1925_v60  ;;  %v2102_v23 = vpop.permute.xlu1 %2101  ;;  %v1883_v60 = vadd.f32 %v2416_v35, %v4450_v30  ;;  %v1891_v47 = vadd.f32 %v2422_v41, %v4452_v28  ;;  %v2428_v15 = vadd.f32 %v2427_v40, %v2426_v48  ;;  %v2433_v44 = vpop.f32.mrf.mxu1  ;;  %v4455_v30 = vld [vmem:[#allocation80_spill] sm:$0xff] }
 0x2f3   : > { %v1934_v7 = vmax.f32 %v1880_v29, 0.0 }
 0x2f4   : > { %v2180_v1 = vadd.f32 %v2179_v8, %v2149_v46  ;;  %v4451_v8 = vld [vmem:[#allocation10_spill] sm:$0xff]  ;;  %v2425_v46 = vadd.f32 %v4163_v54, %v4153_v20  ;;  %v1935_v2 = vmax.f32 %v1883_v60, 0.0  ;;  %v1937_v16 = vmax.f32 %v1891_v47, 0.0  ;;  %v1587_v40 = vpop.permute.xlu0 %1586 }
 0x2f5   : > { %v1888_v49 = vadd.f32 %v2419_v14, %v4451_v8  ;;  %v2158_v0 = vmul.f32 %v2097_v59, %v1934_v7  ;;  %v1899_v20 = vadd.f32 %v2428_v15, %v4454_v27  ;;  %v2434_v54 = vadd.f32 %v2433_v44, %v2432_v58 }
 0x2f6   : > { %v2181_v53 = vadd.f32 %v2180_v1, %v2150_v34  ;;  %v2112_v37 = vpop.permute.xlu1 %2111  ;;  %v2157_v34 = vmul.f32 %v2092_v32, %v1933_v33  ;;  %v1896_v1 = vadd.f32 %v2425_v46, %v4453_v42  ;;  %v2159_v5 = vmul.f32 %v2102_v23, %v1935_v2 }
 0x2f7   : > { %v1936_v51 = vmax.f32 %v1888_v49, 0.0  ;;  %v2161_v56 = vmul.f32 %v2112_v37, %v1937_v16  ;;  %v1939_v59 = vmax.f32 %v1899_v20, 0.0  ;;  %v4456_v60 = vsub.s32 0, %v4455_v30 }
 0x2f8   : > { %v2182_v24 = vadd.f32 %v2181_v53, %v2151_v36  ;;  %v2431_v36 = vadd.f32 %v2430_v31, %v2429_v12  ;;  %v1938_v53 = vmax.f32 %v1896_v1, 0.0 }
 0x2f9   : > { %v2160_v32 = vmul.f32 %v2107_v4, %v1936_v51 }
 0x2fa   : > { %v2183_v38 = vadd.f32 %v2182_v24, %v2152_v6  ;;  %v2117_v26 = vpop.permute.xlu1 %2116  ;;  %v1904_v62 = vadd.f32 %v2431_v36, %v1582_v50  ;;  %v1907_v6 = vadd.f32 %v2434_v54, %v1587_v40 }
 0x2fb   : > { %v2162_v12 = vmul.f32 %v2117_v26, %v1938_v53 }
 0x2fc   : > { %v2184_v21 = vadd.f32 %v2183_v38, %v2153_v13  ;;  %v1940_v9 = vmax.f32 %v1904_v62, 0.0  ;;  %v1941_v22 = vmax.f32 %v1907_v6, 0.0  ;;  %v2127_v13 = vpop.permute.xlu0 %2126 }
 0x2fe   : > { %v2185_v17 = vadd.f32 %v2184_v21, %v2154_v18  ;;  %v2122_v45 = vpop.permute.xlu1 %2121  ;;  %v2164_v11 = vmul.f32 %v2127_v13, %v1940_v9 }
 0x2ff   : > { %v2163_v23 = vmul.f32 %v2122_v45, %v1939_v59 }
 0x300   : > { %v2186_v39 = vadd.f32 %v2185_v17, %v2155_v19  ;;  %v2207_v21 = vpop.permute.xlu0 %2206 }
 0x301   : > { %v2212_v19 = vrot.slane %v2207_v21, %v4456_v60 }
 0x302   : > { %v2187_v43 = vadd.f32 %v2186_v39, %v2156_v57  ;;  %v2132_v52 = vpop.permute.xlu1 %2131 }
 0x303   : > { %v2165_v38 = vmul.f32 %v2132_v52, %v1941_v22 }
 0x304   : > { %v2188_v10 = vadd.f32 %v2187_v43, %v2157_v34 }
 0x306   : > { %v2189_v61 = vadd.f32 %v2188_v10, %v2158_v0 }
 0x308   : > { %v2190_v48 = vadd.f32 %v2189_v61, %v2159_v5 }
 0x30a   : > { %v2191_v55 = vadd.f32 %v2190_v48, %v2160_v32 }
 0x30c   : > { %v2192_v24 = vadd.f32 %v2191_v55, %v2161_v56 }
 0x30e   : > { %v2193_v35 = vadd.f32 %v2192_v24, %v2162_v12 }
 0x310   : > { %v2194_v3 = vadd.f32 %v2193_v35, %v2163_v23 }
 0x312   : > { %v2195_v63 = vadd.f32 %v2194_v3, %v2164_v11 }
 0x314   : > { %v2196_v29 = vadd.f32 %v2195_v63, %v2165_v38 }
 0x316   : > { %v2197_v31 = vrot.slane %v2196_v29, 4 }
 0x318   : > { %v2198_v18 = vadd.f32 %v2197_v31, %v2196_v29 }
 0x31a   : > { %v2199_v25 = vrot.slane %v2198_v18, 2 }
 0x31c   : > { %v2200_v14 = vadd.f32 %v2199_v25, %v2198_v18 }
 0x31e   : > { %v2201_v4 = vrot.slane %v2200_v14, 1 }
 0x320   : > { %v2202_v33 = vadd.f32 %v2201_v4, %v2200_v14 }
 0x322   : > { %v2213_v41 = vadd.f32 %v2212_v19, %v2202_v33 }
 0x324   : > { %2214 = vst [vmem:[%s270_s30] sm:$0x1] %v2213_v41 }
 0x325   : > { %2568 = shalt.err (!%p2565_p3)
}
 0x326   : > { %s2569_s20 = scalar_lea.hbm %s2226_s15, 16  ;;  %s2573_s23 = scalar_lea.hbm %s4249_s7, 32 }
 0x327   : > { %p2570_p4 = scmp.ne.s32.totalorder %s2226_s15, %s2569_s20  ;;  %p2574_p9 = scmp.lt.s32.totalorder %s2226_s15, %s4249_s7 }
 0x328   : > { %p2575_p10 = scmp.lt.s32.totalorder %s2573_s23, %s2569_s20 }
 0x329   : > { %p2571_p7 = pnand %p2570_p4, %p2703_p5 }
 0x32a   : > { %p2576_p11 = por %p2575_p10, %p2574_p9 }
 0x32b   : > { %p2572_p8 = pneg %p2571_p7 }
 0x32d   : > { %p2577_p12 = pnand %p2576_p11, %p2572_p8 }
 0x32f   : > { %2580 = shalt.err (!%p2577_p12)
}
 0x330   : > { %2451 = dma.vmem_to_hbm [thread:$0]  (%p2703_p5), %s2229_s9, 16, %s2226_s15, %s2216_s16  }
 0x331 PF: > { %p2457_p13 = scmp.ge.s32.totalorder %s2615_s29, 2  ;;  %s2240_s30 = sand.u32 1, %s2603_s26  }
 0x332   : > { %s2241_s10 = scalar_lea.sflag [#allocation4], %s2240_s30 }
 0x333   : > { %p2454_p0 = pnand %p2457_p13, %p2707_p6 }
 0x335   : > { %p2455_p1 = pneg %p2454_p0 }
 0x337   : > { %2598 = dma.done.wait (%p2455_p1), %s2241_s10, 16  }
 0x338   : > { %2600 = vsyncadd (%p2455_p1), %s2241_s10, 4294967280  ;;  %p19_p2 = scmp.ge.s32.totalorder %s2690_s8, 4   ;;  %s4457_s26 = smov %s2607_s27 }
 0x339   : > { %s4458_s27 = smov %s2611_s28  ;;  %s4459_s28 = smov %s2701_s11 }
 0x33a   : > { %s4460_s29 = smov %s2690_s8  ;;  %21 = sbr.rel (!%p19_p2) target bundleno = 6 (0x6), region = 83 }
 0x33f   :  { %2245 = vsyncpa [#allocation4], 1 }
 0x340   :  { %2247 = vsyncpa [#allocation4 + $0x1], 1 }

</bundles_post_ra>
